<compile_context>
chip_gen: v7x
topology: tpu7x:2x2x1
jax: 0.10.0
libtpu: 0.0.40
codegen_flags: <defaults>
</compile_context>

<pallas_src>
import functools

import numpy as np
import jax
import jax.numpy as jnp
from jax import lax
from jax.experimental import pallas as pl
from jax.experimental.pallas import tpu as pltpu


# ----------------------------------------------------------------------------
# Fused kernel: B whole images per grid step, activation layout (C, H*W).
# ----------------------------------------------------------------------------
def _i2r_kernel(x_ref, dw_ref, w12_ref, se_wr_ref, se_we_ref, bias_ref, mask_ref,
                out_ref, *, W, dw_offs, bias_offs):
    B, Cin, HW = x_ref.shape
    Cfin = w12_ref.shape[0]
    Csq = se_wr_ref.shape[0]

    # ---- constants: loaded / sliced once per grid step (hoisted) ------------
    w12 = w12_ref[...]                                    # (Cfin, Cin)  BN1/BN2 folded
    se_wr = se_wr_ref[...]                                # (Csq, Cfin)
    se_we = se_we_ref[...]                                # (Cfin, Csq)
    dw1 = dw_ref[dw_offs[0]:dw_offs[0] + Cin, :]          # (Cin, 9)  * s0 folded
    dw2 = dw_ref[dw_offs[1]:dw_offs[1] + Cfin, :]         # (Cfin, 9) * s3 folded
    o0, o12, o3, obr, obe = bias_offs
    b0 = bias_ref[o0:o0 + Cin, :]                         # (Cin, 1)
    b12 = bias_ref[o12:o12 + Cfin, :]                     # (Cfin, 1)
    b3 = bias_ref[o3:o3 + Cfin, :]                        # (Cfin, 1)
    se_br = bias_ref[obr:obr + Csq, :]                    # (Csq, 1)
    se_be = bias_ref[obe:obe + Cfin, :]                   # (Cfin, 1)

    # 3x3 'same' depthwise taps: static lane-roll shift + precomputed boundary
    # mask (implements the zero padding; roll wraps, mask zeroes wrapped taps).
    taps = []
    mrow = 0
    for dy in (-1, 0, 1):
        for dx in (-1, 0, 1):
            k = (dy + 1) * 3 + (dx + 1)                   # row-major 3x3 tap index
            off = dy * W + dx                             # flat input offset
            if off == 0:
                taps.append((k, 0, None))
            else:
                taps.append((k, (-off) % HW, mask_ref[mrow:mrow + 1, :]))
                mrow += 1

    def dwconv3x3(z, dwt):
        # z: (C, HW) f32; dwt: (C, 9) f32, tap order k = (dy+1)*3 + (dx+1)
        acc = None
        for k, shift, mask in taps:
            wk = dwt[:, k:k + 1]                          # (C, 1) per-channel weight
            if mask is None:
                t = z * wk
            else:
                t = pltpu.roll(z, shift=shift, axis=1) * mask * wk
            acc = t if acc is None else acc + t
        return acc

    for b in range(B):                                    # unrolled; B <= 4
        x = x_ref[b].astype(jnp.float32)                  # (Cin, HW)

        # project_conv (dw 3x3, BN0 scale folded) + bias + swish
        x1 = dwconv3x3(x, dw1) + b0
        x1 = x1 * jax.nn.sigmoid(x1)

        # linear1 + BN1 + linear2 + BN2 folded into one 1x1 matmul, then swish
        y = jnp.dot(w12, x1, preferred_element_type=jnp.float32) + b12
        y = y * jax.nn.sigmoid(y)

        # expand_conv (dw 3x3, stride 1, BN3 scale folded) + bias
        x4 = dwconv3x3(y, dw2) + b3

        # Squeeze-and-Excitation: global avg pool -> 1x1 -> swish -> 1x1 -> sigmoid
        pool = jnp.mean(x4, axis=1, keepdims=True)                        # (Cfin, 1)
        z = jnp.dot(se_wr, pool, preferred_element_type=jnp.float32) + se_br
        z = z * jax.nn.sigmoid(z)
        g = jnp.dot(se_we, z, preferred_element_type=jnp.float32) + se_be

        out_ref[b] = (x4 * jax.nn.sigmoid(g)).astype(out_ref.dtype)


# ----------------------------------------------------------------------------
# Wrapper helpers
# ----------------------------------------------------------------------------
def _ceil8(n):
    return (n + 7) // 8 * 8


def _pack_rows(arrs):
    """Stack arrays along rows with 8-aligned segment starts (sublane aligned)."""
    offs, total = [], 0
    for a in arrs:
        offs.append(total)
        total += _ceil8(a.shape[0])
    width = arrs[0].shape[1]
    packed = np.zeros((total, width), np.float32)
    for a, o in zip(arrs, offs):
        packed[o:o + a.shape[0], :] = np.asarray(a, np.float32)
    return jnp.asarray(packed), tuple(offs)


def _pick_block_batch(n, max_b=4):
    """Largest divisor of n (<= max_b) that keeps >= 2 grid steps when n >= 2."""
    best = 1
    for b in range(1, min(max_b, n) + 1):
        if n % b == 0 and (n // b >= 2 or n == 1):
            best = b
    return best


def _make_tap_masks(H, W):
    """(8, H*W) f32 validity masks for the 8 non-center 3x3 taps ('same' zero pad)."""
    pos = np.arange(H * W)
    hh, ww = pos // W, pos % W
    rows = []
    for dy in (-1, 0, 1):
        for dx in (-1, 0, 1):
            if dy == 0 and dx == 0:
                continue
            valid = ((hh + dy >= 0) & (hh + dy < H) & (ww + dx >= 0) & (ww + dx < W))
            rows.append(valid.astype(np.float32))
    return jnp.asarray(np.stack(rows, axis=0))


def prepare_kernel_params(p):
    """Fold BN into weights and pack the small per-channel tensors (one-time, host-side)."""
    f = lambda a: jnp.asarray(a, jnp.float32)
    s0, s1, b1 = f(p["s0"]), f(p["s1"]), f(p["b1"])
    s2, b2, s3 = f(p["s2"]), f(p["b2"]), f(p["s3"])
    w1, w2 = f(p["w1"]), f(p["w2"])

    dw1 = f(p["dw1"]) * s0                    # fold BN0 scale (per-channel row scale)
    dw2 = f(p["dw2"]) * s3                    # fold BN3 scale
    w12 = ((s2 * w2) * s1.T) @ w1             # diag(s2)·W2·diag(s1)·W1   (Cfin, Cin)
    b12 = s2 * (w2 @ f(p["b1"])) + b2 if False else s2 * (w2 @ b1) + b2

    dw_packed, dw_offs = _pack_rows([dw1, dw2])
    bias_packed, bias_offs = _pack_rows(
        [f(p["b0"]), b12, f(p["b3"]), f(p["se_br"]), f(p["se_be"])])
    return dict(dw=dw_packed, dw_offs=dw_offs, w12=w12,
                se_wr=f(p["se_wr"]), se_we=f(p["se_we"]),
                bias=bias_packed, bias_offs=bias_offs)


def i2r_conv_block(x_nchw, kp):
    """x_nchw: (N, Cin, H, W) float32. kp: prepare_kernel_params(raw). -> (N, Cfin, H, W)."""
    N, Cin, H, W = x_nchw.shape
    HW = H * W
    assert HW % 128 == 0, "flattened spatial dim must be a multiple of 128 (lane-dense)"
    Cfin = kp["w12"].shape[0]
    Csq = kp["se_wr"].shape[0]

    B = _pick_block_batch(N)
    masks = _make_tap_masks(H, W)
    x = x_nchw.reshape(N, Cin, HW).astype(jnp.float32)    # view: no transpose / pad

    kernel = functools.partial(_i2r_kernel, W=W,
                               dw_offs=kp["dw_offs"], bias_offs=kp["bias_offs"])

    def _const(arr):
        nd = arr.ndim
        return pl.BlockSpec(arr.shape, lambda g, _nd=nd: (0,) * _nd)

    # Advisory cost estimate so XLA can overlap this small custom call.
    dw_macs = 9 * (Cin + Cfin) * HW
    mm_macs = Cfin * Cin * HW + Csq * Cfin + Cfin * Csq
    flops = int(N * (2 * (dw_macs + mm_macs) + 8 * (Cin + Cfin) * HW))
    transcendentals = int(N * ((Cin + Cfin) * HW + Csq + Cfin))
    bytes_accessed = int(4 * (N * (Cin + Cfin) * HW + kp["dw"].size + kp["w12"].size
                              + kp["se_wr"].size + kp["se_we"].size + kp["bias"].size
                              + masks.size))

    out = pl.pallas_call(
        kernel,
        out_shape=jax.ShapeDtypeStruct((N, Cfin, HW), jnp.float32),
        grid=(N // B,),
        in_specs=[
            pl.BlockSpec((B, Cin, HW), lambda g: (g, 0, 0)),
            _const(kp["dw"]), _const(kp["w12"]),
            _const(kp["se_wr"]), _const(kp["se_we"]),
            _const(kp["bias"]), _const(masks),
        ],
        out_specs=pl.BlockSpec((B, Cfin, HW), lambda g: (g, 0, 0)),
        compiler_params=pltpu.CompilerParams(dimension_semantics=("parallel",)),
        cost_estimate=pl.CostEstimate(flops=flops, transcendentals=transcendentals,
                                      bytes_accessed=bytes_accessed),
    )(x, kp["dw"], kp["w12"], kp["se_wr"], kp["se_we"], kp["bias"], masks)

    # identity branch: expand_ratio == 2 => self.identity is False -> no residual.
    # TODO(synk): drop_connect is a no-op here (drop_connect_rate=None in forward).
    return out.reshape(N, Cfin, H, W)


# ----------------------------------------------------------------------------
# Pure-JAX reference (correctness check), NCHW throughout, un-folded params.
# ----------------------------------------------------------------------------
def _ref_forward(x, p):
    x = x.astype(jnp.float32)
    dn = ("NCHW", "OIHW", "NCHW")

    def dwconv(z, dwt):
        C = z.shape[1]
        w = dwt.reshape(C, 1, 3, 3)
        return lax.conv_general_dilated(z, w, (1, 1), ((1, 1), (1, 1)),
                                        dimension_numbers=dn,
                                        feature_group_count=C)

    def conv1x1(z, w):
        return lax.conv_general_dilated(z, w.reshape(*w.shape, 1, 1), (1, 1),
                                        "VALID", dimension_numbers=dn)

    def bc(v):
        return v.reshape(1, -1, 1, 1)

    x1 = dwconv(x, p["dw1"]) * bc(p["s0"]) + bc(p["b0"])
    x1 = x1 * jax.nn.sigmoid(x1)
    x2 = conv1x1(x1, p["w1"]) * bc(p["s1"]) + bc(p["b1"])
    x3 = conv1x1(x2, p["w2"]) * bc(p["s2"]) + bc(p["b2"])
    x3 = x3 * jax.nn.sigmoid(x3)
    x4 = dwconv(x3, p["dw2"]) * bc(p["s3"]) + bc(p["b3"])
    s = jnp.mean(x4, axis=(2, 3), keepdims=True)
    s = conv1x1(s, p["se_wr"]) + bc(p["se_br"])
    s = s * jax.nn.sigmoid(s)
    s = conv1x1(s, p["se_we"]) + bc(p["se_be"])
    return jax.nn.sigmoid(s) * x4


# ----------------------------------------------------------------------------
# Deterministic raw parameter construction (original layout, BN un-folded)
# ----------------------------------------------------------------------------
def _make_params(key, Cin, Coup, Cfin, Csq, eps=1e-3):
    ks = jax.random.split(key, 12)
    u = lambda k, s, lo=-0.5, hi=0.5: jax.random.uniform(k, s, jnp.float32, lo, hi)

    def fold_bn(k, n):
        k1, k2, k3, k4 = jax.random.split(k, 4)
        gamma = u(k1, (n, 1), 0.5, 1.5)
        beta = u(k2, (n, 1))
        mean = u(k3, (n, 1))
        var = u(k4, (n, 1), 0.5, 1.5)
        scale = gamma / jnp.sqrt(var + eps)
        return scale, beta - mean * scale

    p = {}
    p["dw1"] = u(ks[0], (Cin, 9))
    p["s0"], p["b0"] = fold_bn(ks[1], Cin)
    p["w1"] = u(ks[2], (Coup, Cin))
    p["s1"], p["b1"] = fold_bn(ks[3], Coup)
    p["w2"] = u(ks[4], (Cfin, Coup))
    p["s2"], p["b2"] = fold_bn(ks[5], Cfin)
    p["dw2"] = u(ks[6], (Cfin, 9))
    p["s3"], p["b3"] = fold_bn(ks[7], Cfin)
    p["se_wr"] = u(ks[8], (Csq, Cfin))
    p["se_br"] = u(ks[9], (Csq, 1))
    p["se_we"] = u(ks[10], (Cfin, Csq))
    p["se_be"] = u(ks[11], (Cfin, 1))
    return p


if __name__ == "__main__":
    # Block config (expand_ratio=2 branch): input_filters=16, output_filters=24,
    # expand_ratio=2 -> oup = 16 // 2 = 8, kernel_size=3, stride=1,
    # se_ratio=0.25 -> num_squeezed = max(1, int(24 / 2 * 0.25)) = 3.
    N, Cin, H, W = 2, 16, 16, 16
    Coup, Cfin, Csq = 8, 24, 3

    key = jax.random.PRNGKey(0)
    kx, kp = jax.random.split(key)
    x = jax.random.normal(kx, (N, Cin, H, W), jnp.float32)
    raw_params = _make_params(kp, Cin, Coup, Cfin, Csq)
    kparams = prepare_kernel_params(raw_params)

    out = jax.block_until_ready(i2r_conv_block(x, kparams))
    ref = jax.block_until_ready(_ref_forward(x, raw_params))

    assert out.shape == (N, Cfin, H, W), out.shape
    np.testing.assert_allclose(np.asarray(out), np.asarray(ref),
                               rtol=1e-4, atol=1e-4)
    print("KERNEL_OK")
</pallas_src>

<mosaic_0001>
module attributes {stable_mosaic.version = 11 : i64} {
  func.func @_i2r_kernel(%arg0: i32, %arg1: memref<1x16x256xf32, #tpu.memory_space<vmem>>, %arg2: memref<40x9xf32, #tpu.memory_space<vmem>>, %arg3: memref<24x16xf32, #tpu.memory_space<vmem>>, %arg4: memref<3x24xf32, #tpu.memory_space<vmem>>, %arg5: memref<24x3xf32, #tpu.memory_space<vmem>>, %arg6: memref<96x1xf32, #tpu.memory_space<vmem>>, %arg7: memref<8x256xf32, #tpu.memory_space<vmem>>, %arg8: memref<1x24x256xf32, #tpu.memory_space<vmem>>) attributes {dimension_semantics = [#tpu.dimension_semantics<parallel>], iteration_bounds = array<i64: 2>, scalar_prefetch = 0 : i64, scratch_operands = 0 : i64, tpu.core_type = #tpu.core_type<tc>, window_params = [{transform_indices = @transform_0, window_bounds = array<i64: 1, 16, 256>}, {pipeline_mode = #tpu.pipeline_mode<synchronous>, transform_indices = @transform_1, window_bounds = array<i64: 40, 9>}, {pipeline_mode = #tpu.pipeline_mode<synchronous>, transform_indices = @transform_2, window_bounds = array<i64: 24, 16>}, {pipeline_mode = #tpu.pipeline_mode<synchronous>, transform_indices = @transform_3, window_bounds = array<i64: 3, 24>}, {pipeline_mode = #tpu.pipeline_mode<synchronous>, transform_indices = @transform_4, window_bounds = array<i64: 24, 3>}, {pipeline_mode = #tpu.pipeline_mode<synchronous>, transform_indices = @transform_5, window_bounds = array<i64: 96, 1>}, {pipeline_mode = #tpu.pipeline_mode<synchronous>, transform_indices = @transform_6, window_bounds = array<i64: 8, 256>}, {transform_indices = @transform_7, window_bounds = array<i64: 1, 24, 256>}]} {
    %c0 = arith.constant 0 : index
    %c0_0 = arith.constant 0 : index
    %0 = vector.load %arg3[%c0, %c0_0] : memref<24x16xf32, #tpu.memory_space<vmem>>, vector<24x16xf32>
    %c0_1 = arith.constant 0 : index
    %c0_2 = arith.constant 0 : index
    %1 = vector.load %arg4[%c0_1, %c0_2] : memref<3x24xf32, #tpu.memory_space<vmem>>, vector<3x24xf32>
    %c0_3 = arith.constant 0 : index
    %c0_4 = arith.constant 0 : index
    %2 = vector.load %arg5[%c0_3, %c0_4] : memref<24x3xf32, #tpu.memory_space<vmem>>, vector<24x3xf32>
    %c0_5 = arith.constant 0 : index
    %c0_6 = arith.constant 0 : index
    %3 = vector.load %arg2[%c0_5, %c0_6] : memref<40x9xf32, #tpu.memory_space<vmem>>, vector<16x9xf32>
    %c16 = arith.constant 16 : index
    %c0_7 = arith.constant 0 : index
    %4 = vector.load %arg2[%c16, %c0_7] : memref<40x9xf32, #tpu.memory_space<vmem>>, vector<24x9xf32>
    %c0_8 = arith.constant 0 : index
    %c0_9 = arith.constant 0 : index
    %5 = vector.load %arg6[%c0_8, %c0_9] : memref<96x1xf32, #tpu.memory_space<vmem>>, vector<16x1xf32>
    %c16_10 = arith.constant 16 : index
    %c0_11 = arith.constant 0 : index
    %6 = vector.load %arg6[%c16_10, %c0_11] : memref<96x1xf32, #tpu.memory_space<vmem>>, vector<24x1xf32>
    %c40 = arith.constant 40 : index
    %c0_12 = arith.constant 0 : index
    %7 = vector.load %arg6[%c40, %c0_12] : memref<96x1xf32, #tpu.memory_space<vmem>>, vector<24x1xf32>
    %c64 = arith.constant 64 : index
    %c0_13 = arith.constant 0 : index
    %8 = vector.load %arg6[%c64, %c0_13] : memref<96x1xf32, #tpu.memory_space<vmem>>, vector<3x1xf32>
    %c72 = arith.constant 72 : index
    %c0_14 = arith.constant 0 : index
    %9 = vector.load %arg6[%c72, %c0_14] : memref<96x1xf32, #tpu.memory_space<vmem>>, vector<24x1xf32>
    %c0_15 = arith.constant 0 : index
    %c0_16 = arith.constant 0 : index
    %10 = vector.load %arg7[%c0_15, %c0_16] : memref<8x256xf32, #tpu.memory_space<vmem>>, vector<1x256xf32>
    %c1 = arith.constant 1 : index
    %c0_17 = arith.constant 0 : index
    %11 = vector.load %arg7[%c1, %c0_17] : memref<8x256xf32, #tpu.memory_space<vmem>>, vector<1x256xf32>
    %c2 = arith.constant 2 : index
    %c0_18 = arith.constant 0 : index
    %12 = vector.load %arg7[%c2, %c0_18] : memref<8x256xf32, #tpu.memory_space<vmem>>, vector<1x256xf32>
    %c3 = arith.constant 3 : index
    %c0_19 = arith.constant 0 : index
    %13 = vector.load %arg7[%c3, %c0_19] : memref<8x256xf32, #tpu.memory_space<vmem>>, vector<1x256xf32>
    %c4 = arith.constant 4 : index
    %c0_20 = arith.constant 0 : index
    %14 = vector.load %arg7[%c4, %c0_20] : memref<8x256xf32, #tpu.memory_space<vmem>>, vector<1x256xf32>
    %c5 = arith.constant 5 : index
    %c0_21 = arith.constant 0 : index
    %15 = vector.load %arg7[%c5, %c0_21] : memref<8x256xf32, #tpu.memory_space<vmem>>, vector<1x256xf32>
    %c6 = arith.constant 6 : index
    %c0_22 = arith.constant 0 : index
    %16 = vector.load %arg7[%c6, %c0_22] : memref<8x256xf32, #tpu.memory_space<vmem>>, vector<1x256xf32>
    %c7 = arith.constant 7 : index
    %c0_23 = arith.constant 0 : index
    %17 = vector.load %arg7[%c7, %c0_23] : memref<8x256xf32, #tpu.memory_space<vmem>>, vector<1x256xf32>
    %c0_24 = arith.constant 0 : index
    %c0_25 = arith.constant 0 : index
    %c0_26 = arith.constant 0 : index
    %18 = vector.load %arg1[%c0_24, %c0_25, %c0_26] : memref<1x16x256xf32, #tpu.memory_space<vmem>>, vector<1x16x256xf32>
    %19 = vector.shape_cast %18 : vector<1x16x256xf32> to vector<16x256xf32>
    %20 = vector.extract_strided_slice %3 {offsets = [0, 0], sizes = [16, 1], strides = [1, 1]} : vector<16x9xf32> to vector<16x1xf32>
    %c17_i32 = arith.constant 17 : i32
    %21 = tpu.dynamic_rotate %19 by %c17_i32 dim 1 : vector<16x256xf32>, i32 -> vector<16x256xf32>
    %22 = vector.broadcast %10 : vector<1x256xf32> to vector<16x256xf32>
    %23 = arith.mulf %21, %22 : vector<16x256xf32>
    %24 = vector.broadcast %20 : vector<16x1xf32> to vector<16x256xf32>
    %25 = arith.mulf %23, %24 : vector<16x256xf32>
    %26 = vector.extract_strided_slice %3 {offsets = [0, 1], sizes = [16, 1], strides = [1, 1]} : vector<16x9xf32> to vector<16x1xf32>
    %c16_i32 = arith.constant 16 : i32
    %27 = tpu.dynamic_rotate %19 by %c16_i32 dim 1 : vector<16x256xf32>, i32 -> vector<16x256xf32>
    %28 = vector.broadcast %11 : vector<1x256xf32> to vector<16x256xf32>
    %29 = arith.mulf %27, %28 : vector<16x256xf32>
    %30 = vector.broadcast %26 : vector<16x1xf32> to vector<16x256xf32>
    %31 = arith.mulf %29, %30 : vector<16x256xf32>
    %32 = arith.addf %25, %31 : vector<16x256xf32>
    %33 = vector.extract_strided_slice %3 {offsets = [0, 2], sizes = [16, 1], strides = [1, 1]} : vector<16x9xf32> to vector<16x1xf32>
    %c15_i32 = arith.constant 15 : i32
    %34 = tpu.dynamic_rotate %19 by %c15_i32 dim 1 : vector<16x256xf32>, i32 -> vector<16x256xf32>
    %35 = vector.broadcast %12 : vector<1x256xf32> to vector<16x256xf32>
    %36 = arith.mulf %34, %35 : vector<16x256xf32>
    %37 = vector.broadcast %33 : vector<16x1xf32> to vector<16x256xf32>
    %38 = arith.mulf %36, %37 : vector<16x256xf32>
    %39 = arith.addf %32, %38 : vector<16x256xf32>
    %40 = vector.extract_strided_slice %3 {offsets = [0, 3], sizes = [16, 1], strides = [1, 1]} : vector<16x9xf32> to vector<16x1xf32>
    %c1_i32 = arith.constant 1 : i32
    %41 = tpu.dynamic_rotate %19 by %c1_i32 dim 1 : vector<16x256xf32>, i32 -> vector<16x256xf32>
    %42 = vector.broadcast %13 : vector<1x256xf32> to vector<16x256xf32>
    %43 = arith.mulf %41, %42 : vector<16x256xf32>
    %44 = vector.broadcast %40 : vector<16x1xf32> to vector<16x256xf32>
    %45 = arith.mulf %43, %44 : vector<16x256xf32>
    %46 = arith.addf %39, %45 : vector<16x256xf32>
    %47 = vector.extract_strided_slice %3 {offsets = [0, 4], sizes = [16, 1], strides = [1, 1]} : vector<16x9xf32> to vector<16x1xf32>
    %48 = vector.broadcast %47 : vector<16x1xf32> to vector<16x256xf32>
    %49 = arith.mulf %19, %48 : vector<16x256xf32>
    %50 = arith.addf %46, %49 : vector<16x256xf32>
    %51 = vector.extract_strided_slice %3 {offsets = [0, 5], sizes = [16, 1], strides = [1, 1]} : vector<16x9xf32> to vector<16x1xf32>
    %c255_i32 = arith.constant 255 : i32
    %52 = tpu.dynamic_rotate %19 by %c255_i32 dim 1 : vector<16x256xf32>, i32 -> vector<16x256xf32>
    %53 = vector.broadcast %14 : vector<1x256xf32> to vector<16x256xf32>
    %54 = arith.mulf %52, %53 : vector<16x256xf32>
    %55 = vector.broadcast %51 : vector<16x1xf32> to vector<16x256xf32>
    %56 = arith.mulf %54, %55 : vector<16x256xf32>
    %57 = arith.addf %50, %56 : vector<16x256xf32>
    %58 = vector.extract_strided_slice %3 {offsets = [0, 6], sizes = [16, 1], strides = [1, 1]} : vector<16x9xf32> to vector<16x1xf32>
    %c241_i32 = arith.constant 241 : i32
    %59 = tpu.dynamic_rotate %19 by %c241_i32 dim 1 : vector<16x256xf32>, i32 -> vector<16x256xf32>
    %60 = vector.broadcast %15 : vector<1x256xf32> to vector<16x256xf32>
    %61 = arith.mulf %59, %60 : vector<16x256xf32>
    %62 = vector.broadcast %58 : vector<16x1xf32> to vector<16x256xf32>
    %63 = arith.mulf %61, %62 : vector<16x256xf32>
    %64 = arith.addf %57, %63 : vector<16x256xf32>
    %65 = vector.extract_strided_slice %3 {offsets = [0, 7], sizes = [16, 1], strides = [1, 1]} : vector<16x9xf32> to vector<16x1xf32>
    %c240_i32 = arith.constant 240 : i32
    %66 = tpu.dynamic_rotate %19 by %c240_i32 dim 1 : vector<16x256xf32>, i32 -> vector<16x256xf32>
    %67 = vector.broadcast %16 : vector<1x256xf32> to vector<16x256xf32>
    %68 = arith.mulf %66, %67 : vector<16x256xf32>
    %69 = vector.broadcast %65 : vector<16x1xf32> to vector<16x256xf32>
    %70 = arith.mulf %68, %69 : vector<16x256xf32>
    %71 = arith.addf %64, %70 : vector<16x256xf32>
    %72 = vector.extract_strided_slice %3 {offsets = [0, 8], sizes = [16, 1], strides = [1, 1]} : vector<16x9xf32> to vector<16x1xf32>
    %c239_i32 = arith.constant 239 : i32
    %73 = tpu.dynamic_rotate %19 by %c239_i32 dim 1 : vector<16x256xf32>, i32 -> vector<16x256xf32>
    %74 = vector.broadcast %17 : vector<1x256xf32> to vector<16x256xf32>
    %75 = arith.mulf %73, %74 : vector<16x256xf32>
    %76 = vector.broadcast %72 : vector<16x1xf32> to vector<16x256xf32>
    %77 = arith.mulf %75, %76 : vector<16x256xf32>
    %78 = arith.addf %71, %77 : vector<16x256xf32>
    %79 = vector.broadcast %5 : vector<16x1xf32> to vector<16x256xf32>
    %80 = arith.addf %78, %79 : vector<16x256xf32>
    %81 = arith.negf %80 : vector<16x256xf32>
    %82 = math.exp %81 : vector<16x256xf32>
    %cst = arith.constant 1.000000e+00 : f32
    %83 = vector.broadcast %cst : f32 to vector<16x256xf32>
    %84 = arith.addf %83, %82 : vector<16x256xf32>
    %85 = arith.divf %83, %84 : vector<16x256xf32>
    %86 = arith.mulf %80, %85 : vector<16x256xf32>
    %cst_27 = arith.constant dense<0.000000e+00> : vector<24x256xf32>
    %87 = tpu.matmul %0, %86, %cst_27 {dimension_numbers = #tpu.dot_dimension_numbers<[1], [0], [0], [1], [0, 0, 1, 1], [], []>} : vector<24x16xf32>, vector<16x256xf32>, vector<24x256xf32> -> vector<24x256xf32>
    %88 = vector.broadcast %6 : vector<24x1xf32> to vector<24x256xf32>
    %89 = arith.addf %87, %88 : vector<24x256xf32>
    %90 = arith.negf %89 : vector<24x256xf32>
    %91 = math.exp %90 : vector<24x256xf32>
    %cst_28 = arith.constant 1.000000e+00 : f32
    %92 = vector.broadcast %cst_28 : f32 to vector<24x256xf32>
    %93 = arith.addf %92, %91 : vector<24x256xf32>
    %94 = arith.divf %92, %93 : vector<24x256xf32>
    %95 = arith.mulf %89, %94 : vector<24x256xf32>
    %96 = vector.extract_strided_slice %4 {offsets = [0, 0], sizes = [24, 1], strides = [1, 1]} : vector<24x9xf32> to vector<24x1xf32>
    %c17_i32_29 = arith.constant 17 : i32
    %97 = tpu.dynamic_rotate %95 by %c17_i32_29 dim 1 : vector<24x256xf32>, i32 -> vector<24x256xf32>
    %98 = vector.broadcast %10 : vector<1x256xf32> to vector<24x256xf32>
    %99 = arith.mulf %97, %98 : vector<24x256xf32>
    %100 = vector.broadcast %96 : vector<24x1xf32> to vector<24x256xf32>
    %101 = arith.mulf %99, %100 : vector<24x256xf32>
    %102 = vector.extract_strided_slice %4 {offsets = [0, 1], sizes = [24, 1], strides = [1, 1]} : vector<24x9xf32> to vector<24x1xf32>
    %c16_i32_30 = arith.constant 16 : i32
    %103 = tpu.dynamic_rotate %95 by %c16_i32_30 dim 1 : vector<24x256xf32>, i32 -> vector<24x256xf32>
    %104 = vector.broadcast %11 : vector<1x256xf32> to vector<24x256xf32>
    %105 = arith.mulf %103, %104 : vector<24x256xf32>
    %106 = vector.broadcast %102 : vector<24x1xf32> to vector<24x256xf32>
    %107 = arith.mulf %105, %106 : vector<24x256xf32>
    %108 = arith.addf %101, %107 : vector<24x256xf32>
    %109 = vector.extract_strided_slice %4 {offsets = [0, 2], sizes = [24, 1], strides = [1, 1]} : vector<24x9xf32> to vector<24x1xf32>
    %c15_i32_31 = arith.constant 15 : i32
    %110 = tpu.dynamic_rotate %95 by %c15_i32_31 dim 1 : vector<24x256xf32>, i32 -> vector<24x256xf32>
    %111 = vector.broadcast %12 : vector<1x256xf32> to vector<24x256xf32>
    %112 = arith.mulf %110, %111 : vector<24x256xf32>
    %113 = vector.broadcast %109 : vector<24x1xf32> to vector<24x256xf32>
    %114 = arith.mulf %112, %113 : vector<24x256xf32>
    %115 = arith.addf %108, %114 : vector<24x256xf32>
    %116 = vector.extract_strided_slice %4 {offsets = [0, 3], sizes = [24, 1], strides = [1, 1]} : vector<24x9xf32> to vector<24x1xf32>
    %c1_i32_32 = arith.constant 1 : i32
    %117 = tpu.dynamic_rotate %95 by %c1_i32_32 dim 1 : vector<24x256xf32>, i32 -> vector<24x256xf32>
    %118 = vector.broadcast %13 : vector<1x256xf32> to vector<24x256xf32>
    %119 = arith.mulf %117, %118 : vector<24x256xf32>
    %120 = vector.broadcast %116 : vector<24x1xf32> to vector<24x256xf32>
    %121 = arith.mulf %119, %120 : vector<24x256xf32>
    %122 = arith.addf %115, %121 : vector<24x256xf32>
    %123 = vector.extract_strided_slice %4 {offsets = [0, 4], sizes = [24, 1], strides = [1, 1]} : vector<24x9xf32> to vector<24x1xf32>
    %124 = vector.broadcast %123 : vector<24x1xf32> to vector<24x256xf32>
    %125 = arith.mulf %95, %124 : vector<24x256xf32>
    %126 = arith.addf %122, %125 : vector<24x256xf32>
    %127 = vector.extract_strided_slice %4 {offsets = [0, 5], sizes = [24, 1], strides = [1, 1]} : vector<24x9xf32> to vector<24x1xf32>
    %c255_i32_33 = arith.constant 255 : i32
    %128 = tpu.dynamic_rotate %95 by %c255_i32_33 dim 1 : vector<24x256xf32>, i32 -> vector<24x256xf32>
    %129 = vector.broadcast %14 : vector<1x256xf32> to vector<24x256xf32>
    %130 = arith.mulf %128, %129 : vector<24x256xf32>
    %131 = vector.broadcast %127 : vector<24x1xf32> to vector<24x256xf32>
    %132 = arith.mulf %130, %131 : vector<24x256xf32>
    %133 = arith.addf %126, %132 : vector<24x256xf32>
    %134 = vector.extract_strided_slice %4 {offsets = [0, 6], sizes = [24, 1], strides = [1, 1]} : vector<24x9xf32> to vector<24x1xf32>
    %c241_i32_34 = arith.constant 241 : i32
    %135 = tpu.dynamic_rotate %95 by %c241_i32_34 dim 1 : vector<24x256xf32>, i32 -> vector<24x256xf32>
    %136 = vector.broadcast %15 : vector<1x256xf32> to vector<24x256xf32>
    %137 = arith.mulf %135, %136 : vector<24x256xf32>
    %138 = vector.broadcast %134 : vector<24x1xf32> to vector<24x256xf32>
    %139 = arith.mulf %137, %138 : vector<24x256xf32>
    %140 = arith.addf %133, %139 : vector<24x256xf32>
    %141 = vector.extract_strided_slice %4 {offsets = [0, 7], sizes = [24, 1], strides = [1, 1]} : vector<24x9xf32> to vector<24x1xf32>
    %c240_i32_35 = arith.constant 240 : i32
    %142 = tpu.dynamic_rotate %95 by %c240_i32_35 dim 1 : vector<24x256xf32>, i32 -> vector<24x256xf32>
    %143 = vector.broadcast %16 : vector<1x256xf32> to vector<24x256xf32>
    %144 = arith.mulf %142, %143 : vector<24x256xf32>
    %145 = vector.broadcast %141 : vector<24x1xf32> to vector<24x256xf32>
    %146 = arith.mulf %144, %145 : vector<24x256xf32>
    %147 = arith.addf %140, %146 : vector<24x256xf32>
    %148 = vector.extract_strided_slice %4 {offsets = [0, 8], sizes = [24, 1], strides = [1, 1]} : vector<24x9xf32> to vector<24x1xf32>
    %c239_i32_36 = arith.constant 239 : i32
    %149 = tpu.dynamic_rotate %95 by %c239_i32_36 dim 1 : vector<24x256xf32>, i32 -> vector<24x256xf32>
    %150 = vector.broadcast %17 : vector<1x256xf32> to vector<24x256xf32>
    %151 = arith.mulf %149, %150 : vector<24x256xf32>
    %152 = vector.broadcast %148 : vector<24x1xf32> to vector<24x256xf32>
    %153 = arith.mulf %151, %152 : vector<24x256xf32>
    %154 = arith.addf %147, %153 : vector<24x256xf32>
    %155 = vector.broadcast %7 : vector<24x1xf32> to vector<24x256xf32>
    %156 = arith.addf %154, %155 : vector<24x256xf32>
    %cst_37 = arith.constant dense<0.000000e+00> : vector<24xf32>
    %157 = vector.multi_reduction <add>, %156, %cst_37 [1] : vector<24x256xf32> to vector<24xf32>
    %158 = vector.shape_cast %157 : vector<24xf32> to vector<24x1xf32>
    %cst_38 = arith.constant 2.560000e+02 : f32
    %159 = vector.broadcast %cst_38 : f32 to vector<24x1xf32>
    %160 = arith.divf %158, %159 : vector<24x1xf32>
    %cst_39 = arith.constant dense<0.000000e+00> : vector<3x1xf32>
    %161 = tpu.matmul %1, %160, %cst_39 {dimension_numbers = #tpu.dot_dimension_numbers<[1], [0], [0], [1], [0, 0, 1, 1], [], []>} : vector<3x24xf32>, vector<24x1xf32>, vector<3x1xf32> -> vector<3x1xf32>
    %162 = arith.addf %161, %8 : vector<3x1xf32>
    %163 = arith.negf %162 : vector<3x1xf32>
    %164 = math.exp %163 : vector<3x1xf32>
    %cst_40 = arith.constant 1.000000e+00 : f32
    %165 = vector.broadcast %cst_40 : f32 to vector<3x1xf32>
    %166 = arith.addf %165, %164 : vector<3x1xf32>
    %167 = arith.divf %165, %166 : vector<3x1xf32>
    %168 = arith.mulf %162, %167 : vector<3x1xf32>
    %cst_41 = arith.constant dense<0.000000e+00> : vector<24x1xf32>
    %169 = tpu.matmul %2, %168, %cst_41 {dimension_numbers = #tpu.dot_dimension_numbers<[1], [0], [0], [1], [0, 0, 1, 1], [], []>} : vector<24x3xf32>, vector<3x1xf32>, vector<24x1xf32> -> vector<24x1xf32>
    %170 = arith.addf %169, %9 : vector<24x1xf32>
    %171 = arith.negf %170 : vector<24x1xf32>
    %172 = math.exp %171 : vector<24x1xf32>
    %cst_42 = arith.constant 1.000000e+00 : f32
    %173 = vector.broadcast %cst_42 : f32 to vector<24x1xf32>
    %174 = arith.addf %173, %172 : vector<24x1xf32>
    %175 = arith.divf %173, %174 : vector<24x1xf32>
    %176 = vector.broadcast %175 : vector<24x1xf32> to vector<24x256xf32>
    %177 = arith.mulf %156, %176 : vector<24x256xf32>
    %c0_43 = arith.constant 0 : index
    %c0_44 = arith.constant 0 : index
    %c0_45 = arith.constant 0 : index
    %178 = vector.load %arg8[%c0_43, %c0_44, %c0_45] : memref<1x24x256xf32, #tpu.memory_space<vmem>>, vector<1x24x256xf32>
    %179 = vector.shape_cast %178 : vector<1x24x256xf32> to vector<24x256xf32>
    %180 = vector.shape_cast %177 : vector<24x256xf32> to vector<1x24x256xf32>
    tpu.vector_store %arg8[%c0_43, %c0_44, %c0_45], %180 {strides = array<i32>} : memref<1x24x256xf32, #tpu.memory_space<vmem>>, vector<1x24x256xf32>,
    return
  }
  func.func @transform_0(%arg0: i32) -> (i32, i32, i32) {
    %c0_i32 = arith.constant 0 : i32
    %c0_i32_0 = arith.constant 0 : i32
    %c0_i32_1 = arith.constant 0 : i32
    return %arg0, %c0_i32, %c0_i32_0 : i32, i32, i32
  }
  func.func @transform_1(%arg0: i32) -> (i32, i32) {
    %c0_i32 = arith.constant 0 : i32
    %c0_i32_0 = arith.constant 0 : i32
    %c0_i32_1 = arith.constant 0 : i32
    return %c0_i32, %c0_i32_0 : i32, i32
  }
  func.func @transform_2(%arg0: i32) -> (i32, i32) {
    %c0_i32 = arith.constant 0 : i32
    %c0_i32_0 = arith.constant 0 : i32
    %c0_i32_1 = arith.constant 0 : i32
    return %c0_i32, %c0_i32_0 : i32, i32
  }
  func.func @transform_3(%arg0: i32) -> (i32, i32) {
    %c0_i32 = arith.constant 0 : i32
    %c0_i32_0 = arith.constant 0 : i32
    %c0_i32_1 = arith.constant 0 : i32
    return %c0_i32, %c0_i32_0 : i32, i32
  }
  func.func @transform_4(%arg0: i32) -> (i32, i32) {
    %c0_i32 = arith.constant 0 : i32
    %c0_i32_0 = arith.constant 0 : i32
    %c0_i32_1 = arith.constant 0 : i32
    return %c0_i32, %c0_i32_0 : i32, i32
  }
  func.func @transform_5(%arg0: i32) -> (i32, i32) {
    %c0_i32 = arith.constant 0 : i32
    %c0_i32_0 = arith.constant 0 : i32
    %c0_i32_1 = arith.constant 0 : i32
    return %c0_i32, %c0_i32_0 : i32, i32
  }
  func.func @transform_6(%arg0: i32) -> (i32, i32) {
    %c0_i32 = arith.constant 0 : i32
    %c0_i32_0 = arith.constant 0 : i32
    %c0_i32_1 = arith.constant 0 : i32
    return %c0_i32, %c0_i32_0 : i32, i32
  }
  func.func @transform_7(%arg0: i32) -> (i32, i32, i32) {
    %c0_i32 = arith.constant 0 : i32
    %c0_i32_0 = arith.constant 0 : i32
    %c0_i32_1 = arith.constant 0 : i32
    return %arg0, %c0_i32, %c0_i32_0 : i32, i32, i32
  }
}

</mosaic_0001>

<bundles_post_ra>
// kernel: tpu_custom_call.1
= control target key start
LH: loop header
LB: loop body
LE: loop exit
PB: predicated region body
PF: predicated region fallthrough
CT: control target
= control target key end

     0   :  { %12 = vsyncpa [#allocation3], 0  ;;  %s3099_s0 = inlined_call_operand.vmem [shape: f32[2,16,256], index: 0, kind: input, shape index: {}]   ;;  %s3100_s1 = inlined_call_operand.vmem [shape: f32[40,9], index: 1, kind: input, shape index: {}]   ;;  %s3101_s2 = inlined_call_operand.vmem [shape: f32[24,16], index: 2, kind: input, shape index: {}]   ;;  %s3102_s3 = inlined_call_operand.vmem [shape: f32[3,24], index: 3, kind: input, shape index: {}]   ;;  %s3103_s4 = inlined_call_operand.vmem [shape: f32[24,3], index: 4, kind: input, shape index: {}]   ;;  %s3104_s5 = inlined_call_operand.vmem [shape: f32[96,1], index: 5, kind: input, shape index: {}]   ;;  %s3105_s6 = inlined_call_operand.vmem [shape: f32[8,256], index: 6, kind: input, shape index: {}]   ;;  %s3106_s7 = inlined_call_operand.hbm [shape: f32[2,24,256], index: 7, kind: output, shape index: {}]  }
   0x1   :  { %14 = vsyncpa [#allocation3 + $0x1], 0  ;;  %s1976_s24 = smov 0   ;;  %s1978_s25 = smov 0  }
   0x2   :  { %s1980_s26 = smov 0   ;;  %s1982_s27 = smov 0  }
   0x3 LB: > { %s1997_s28 = sadd.s32 4294967295, %s1912_s27   ;;  %s1615_s29 = sadd.s32 4294967294, %s1912_s27   ;;  %s1912_s27 = sphi %s1982_s27, %s3210_s27   ;;  %s1908_s26 = sphi %s1980_s26, %s3209_s26   ;;  %s1904_s25 = sphi %s1978_s25, %s3208_s25   ;;  %s1900_s24 = sphi %s1976_s24, %s3207_s24  }
   0x4   : > { %s2001_s30 = sadd.s32 1, %s1912_s27   ;;  %s179_s8 = sadd.s32 1, %s1908_s26 }
   0x5   : > { %s176_s9 = ssub.s32 %s1912_s27, %s2001_s30  ;;  %p189_p0 = scmp.ne.s32.totalorder %s1908_s26, %s1904_s25 }
   0x6   : > { %p177_p1 = scmp.eq.s32.totalorder %s176_s9, 0  ;;  %p190_p2 = scmp.eq.s32.totalorder %s1997_s28, 1 }
   0x7   : > { %p195_p3 = scmp.ne.s32.totalorder %s1904_s25, %s1900_s24  ;;  %p196_p4 = scmp.eq.s32.totalorder %s1615_s29, 1 }
   0x8   : > { %s2012_s10 = scalar_select %p177_p1, %s1908_s26, %s179_s8  }
   0x9   : > { %p2014_p5 = por %p190_p2, %p189_p0  ;;  %p2018_p6 = por %p196_p4, %p195_p3 }
   0xa   : > { %p1618_p7 = scmp.ge.s32.totalorder %s1912_s27, 1  ;;  %p240_p8 = scmp.lt.s32.totalorder %s1912_s27, 3 }
   0xc   : > { %p241_p9 = pnand %p1618_p7, %p240_p8 }
   0xe   : > { %244 = sbr.rel (%p241_p9) target bundleno = 1558 (0x616), region = 48 }
  0x15   : > { %v2027_v0 = vld [vmem:[%s3100_s1] sm:$0xff]  ;;  %p272_p10 = scmp.lt.s32.totalorder %s1997_s28, 1  ;;  %v1914_v1 = vmov 1   ;;  %v3113_v2 = vmov 0   ;;  %v2038_v3 = vld [vmem:[%s3100_s1 + $0x8] sm:$0xff]  ;;  %v1916_v4 = vmov 2   ;;  %v328_v54 = vlaneseq }
  0x16   : > { %1752 = vset.pattern.permute.xlu1 %v1914_v1  ;;  %1751 = vset.pattern.permute.xlu0 %v3113_v2  ;;  %s1917_s22 = smov 17   ;;  %v1918_v9 = vmov 3   ;;  %s1919_s23 = smov 16   ;;  %v3116_v10 = vmov 4   ;;  %v3112_v11 = vmov 5   ;;  %v3115_v12 = vmov 7  }
  0x17   : > { %393 = vperm.xlu1 %1752, %v2027_v0   ;;  %352 = vperm.xlu0 %1751, %v2027_v0   ;;  %s273_s15 = scalar_select %p272_p10, %s1997_s28, 1  ;;  %v3109_v13 = vmov 6   ;;  %v3110_v14 = vmov 8   ;;  %v289_v15 = vld [vmem:[%s3104_s5] sm:$0xff]  ;;  %v292_v16 = vld [vmem:[%s3104_s5 + $0x18] sm:$0xff]  ;;  %v290_v18 = vld [vmem:[%s3104_s5 + $0x8] sm:$0xff] }
  0x18   : > { %s1920_s29 = smov 15   ;;  %s1922_s8 = smov 1   ;;  %v2147_v17 = vld [vmem:[%s3100_s1 + $0x18] sm:$0xff]  ;;  %v291_v19 = vld [vmem:[%s3104_s5 + $0x10] sm:$0xff]  ;;  %v293_v20 = vld [vmem:[%s3104_s5 + $0x20] sm:$0xff]  ;;  %v3107_v35 = vmov 0.0  }
  0x19   : > { %s1653_s18 = sshll.u32 %s273_s15, 5  ;;  %s1924_s9 = smov 127   ;;  %819 = vmatprep.mubr.f32.mxu0 %v3107_v35  ;;  %1671 = vmatprep.subr.mxu1 %v3107_v35  ;;  %v2214_v40 = vld [vmem:[%s3100_s1 + $0x10] sm:$0xff]  ;;  %v2233_v45 = vld [vmem:[%s3100_s1 + $0x20] sm:$0xff]  ;;  %v337_v57 = vshrl.u32 %v328_v54, 7  ;;  %v2272_v59 = vand.u32 127, %v328_v54 }
  0x1a   : > { %s276_s21 = scalar_lea.vmem %s3099_s0, %s1653_s18  ;;  %s3131_s13 = smov 113   ;;  %v301_v61 = vld [vmem:[%s3105_s6] ss:$8 sm:$0x3]  ;;  %vm745_vm8 = vcmask 130048   ;;  %vm1933_vm9 = vmmov 0  }
  0x1b   : > { %397 = vperm.xlu1 %1752, %v2038_v3   ;;  %357 = vperm.xlu0 %1751, %v2038_v3   ;;  %v2049_v5 = vld [vmem:[%s276_s21 + $0x10] sm:$0xff]  ;;  %v2051_v6 = vld [vmem:[%s276_s21] sm:$0xff]  ;;  %v2057_v7 = vld [vmem:[%s276_s21 + $0x18] sm:$0xff]  ;;  %s3129_s14 = smov 112   ;;  %s1930_s15 = smov 111   ;;  %v2282_v62 = vsub.s32 0, %v337_v57 }
  0x1c   : > { %v2059_v8 = vld [vmem:[%s276_s21 + $0x8] sm:$0xff]  ;;  %v2285_v63 = vsub.s32 1, %v337_v57  ;;  %vm330_vm0 = vcmp.lt.s32.totalorder %v2272_v59, 17  ;;  %vm372_vm1 = vcmp.lt.s32.totalorder %v2272_v59, 16  ;;  %vm416_vm2 = vcmp.lt.s32.totalorder %v2272_v59, 15  ;;  %s1690_s18 = smul.u32 768, %s1997_s28 }
  0x1d   : > { %vm460_vm3 = vcmp.lt.s32.totalorder %v2272_v59, 1  ;;  %vm520_vm4 = vcmp.lt.s32.totalorder %v2272_v59, 127  ;;  %vm564_vm5 = vcmp.lt.s32.totalorder %v2272_v59, 113  ;;  %vm652_vm6 = vcmp.lt.s32.totalorder %v2272_v59, 111  ;;  %s1934_s21 = smov [#allocation2]  }
  0x1e   : > { %vm608_vm7 = vcmp.lt.s32.totalorder %v2272_v59, 112  ;;  %vm1319_vm10 = vcmask 195584   ;;  %vm1410_vm11 = vcmask 1042432   ;;  %vm1400_vm12 = vcmask 23552  }
  0x1f   : > { %1754 = vset.pattern.permute.xlu1 %v1916_v4  ;;  %1753 = vset.pattern.permute.xlu0 %v1916_v4 }
  0x20   : > { %441 = vperm.xlu1 %1754, %v2038_v3   ;;  %437 = vperm.xlu0 %1753, %v2027_v0  }
  0x24   : > { %322 = vrot.lane.b32.xlu0 %v2049_v5, %s1917_s22  ;;  %320 = vrot.lane.b32.xlu1 %v2051_v6, %s1917_s22 }
  0x25   : > { %1755 = vset.pattern.permute.xlu1 %v1918_v9  ;;  %1756 = vset.pattern.permute.xlu0 %v1918_v9 }
  0x28   : > { %326 = vrot.lane.b32.xlu0 %v2057_v7, %s1917_s22  ;;  %324 = vrot.lane.b32.xlu1 %v2059_v8, %s1917_s22 }
  0x2c   : > { %366 = vrot.lane.b32.xlu0 %v2049_v5, %s1919_s23  ;;  %364 = vrot.lane.b32.xlu1 %v2051_v6, %s1919_s23 }
  0x30   : > { %370 = vrot.lane.b32.xlu0 %v2057_v7, %s1919_s23  ;;  %368 = vrot.lane.b32.xlu1 %v2059_v8, %s1919_s23 }
  0x34   : > { %485 = vperm.xlu0 %1756, %v2038_v3   ;;  %481 = vperm.xlu1 %1755, %v2027_v0  }
  0x38   : > { %412 = vrot.lane.b32.xlu0 %v2059_v8, %s1920_s29  ;;  %408 = vrot.lane.b32.xlu1 %v2051_v6, %s1920_s29 }
  0x39   : > { %1757 = vset.pattern.permute.xlu0 %v3116_v10  ;;  %1758 = vset.pattern.permute.xlu1 %v3116_v10 }
  0x3c   : > { %497 = vperm.xlu0 %1757, %v2027_v0   ;;  %410 = vrot.lane.b32.xlu1 %v2049_v5, %s1920_s29 }
  0x40   : > { %454 = vrot.lane.b32.xlu0 %v2049_v5, %s1922_s8  ;;  %414 = vrot.lane.b32.xlu1 %v2057_v7, %s1920_s29 }
  0x41   : > { %1760 = vset.pattern.permute.xlu0 %v3112_v11 }
  0x44   : > { %458 = vrot.lane.b32.xlu0 %v2057_v7, %s1922_s8  ;;  %501 = vperm.xlu1 %1758, %v2038_v3  }
  0x48   : > { %545 = vperm.xlu0 %1760, %v2038_v3   ;;  %452 = vrot.lane.b32.xlu1 %v2051_v6, %s1922_s8 }
  0x49   : > { %1759 = vset.pattern.permute.xlu1 %v3112_v11 }
  0x4c   : > { %512 = vrot.lane.b32.xlu0 %v2051_v6, %s1924_s9  ;;  %456 = vrot.lane.b32.xlu1 %v2059_v8, %s1922_s8 }
  0x4d   : > { %1762 = vset.pattern.permute.xlu0 %v3115_v12 }
  0x50   : > { %516 = vrot.lane.b32.xlu0 %v2059_v8, %s1924_s9  ;;  %541 = vperm.xlu1 %1759, %v2027_v0  }
  0x54   : > { %629 = vperm.xlu0 %1762, %v2027_v0   ;;  %1761 = vset.pattern.permute.xlu1 %v3109_v13 }
  0x55   : > { %585 = vperm.xlu1 %1761, %v2027_v0  }
  0x58   : > { %558 = vrot.lane.b32.xlu0 %v2049_v5, %s3131_s13 }
  0x59   : > { %589 = vperm.xlu1 %1761, %v2038_v3   ;;  %1765 = vset.pattern.permute.xlu0 %v3110_v14 }
  0x5c   : > { %562 = vrot.lane.b32.xlu0 %v2057_v7, %s3131_s13 }
  0x5d   : > { %514 = vrot.lane.b32.xlu1 %v2049_v5, %s1924_s9 }
  0x5e   : > { %1763 = vset.pattern.permute.xlu1 %v3115_v12 }
  0x60   : > { %677 = vperm.xlu0 %1765, %v2038_v3  }
  0x61   : > { %518 = vrot.lane.b32.xlu1 %v2057_v7, %s1924_s9 }
  0x64   : > { %604 = vrot.lane.b32.xlu0 %v2059_v8, %s3129_s14 }
  0x65   : > { %633 = vperm.xlu1 %1763, %v2038_v3   ;;  %1766 = vset.pattern.permute.xlu0 %v3113_v2  ;;  %v1622_v3 = vld [vmem:[%s3105_s6 + $0x2] ss:$8 sm:$0x3] }
  0x66   : > { %v2339_v35 = vrot.slane %v1622_v3, %v2285_v63 }
  0x68   : > { %644 = vrot.lane.b32.xlu0 %v2051_v6, %s1930_s15 }
  0x69   : > { %556 = vrot.lane.b32.xlu1 %v2051_v6, %s3131_s13 }
  0x6a   : > { %1764 = vset.pattern.permute.xlu1 %v3110_v14 }
  0x6c   : > { %648 = vrot.lane.b32.xlu0 %v2059_v8, %s1930_s15 }
  0x6d   : > { %560 = vrot.lane.b32.xlu1 %v2059_v8, %s3131_s13  ;;  %s3171_s13 = smov 113  }
  0x70   : > { %690 = vperm.xlu0 %1766, %v289_v15   ;;  %v2304_v15 = vrot.slane %v301_v61, %v2282_v62 }
  0x71   : > { %673 = vperm.xlu1 %1764, %v2027_v0   ;;  %v1621_v0 = vld [vmem:[%s3105_s6 + $0x1] ss:$8 sm:$0x3] }
  0x72   : > { %3153 = vst [vmem:[#allocation7_spill] sm:$0xff] %v2304_v15 }
  0x74   : > { %737 = vperm.xlu0 %1766, %v292_v16   ;;  %v2307_v16 = vrot.slane %v1621_v0, %v2282_v62 }
  0x75   : > { %600 = vrot.lane.b32.xlu1 %v2051_v6, %s3129_s14 }
  0x76   : > { %1767 = vset.pattern.permute.xlu1 %v3113_v2  ;;  %3154 = vst [vmem:[#allocation8_spill] sm:$0xff] %v2307_v16 }
  0x78   : > { %1770 = vset.pattern.permute.xlu0 %v1916_v4 }
  0x79   : > { %602 = vrot.lane.b32.xlu1 %v2049_v5, %s3129_s14  ;;  %1002 = vperm.xlu0 %1770, %v2147_v17  }
  0x7d   : > { %606 = vrot.lane.b32.xlu1 %v2057_v7, %s3129_s14  ;;  %1771 = vset.pattern.permute.xlu0 %v1918_v9  ;;  %s3172_s14 = smov 112  }
  0x7e   : > { %1046 = vperm.xlu0 %1771, %v2214_v40  }
  0x81   : > { %646 = vrot.lane.b32.xlu1 %v2049_v5, %s1930_s15 }
  0x82   : > { %1772 = vset.pattern.permute.xlu0 %v1914_v1 }
  0x83   : > { %950 = vperm.xlu0 %1772, %v2214_v40  }
  0x85   : > { %650 = vrot.lane.b32.xlu1 %v2057_v7, %s1930_s15 }
  0x87   : > { %958 = vperm.xlu0 %1772, %v2233_v45  }
  0x89   : > { %695 = vperm.xlu1 %1767, %v290_v18   ;;  %v2310_v18 = vrot.slane %v1621_v0, %v2285_v63  ;;  %v2336_v0 = vrot.slane %v1622_v3, %v2282_v62 }
  0x8b   : > { %1775 = vset.pattern.permute.xlu0 %v3116_v10  ;;  %3155 = vst [vmem:[#allocation9_spill] sm:$0xff] %v2310_v18 }
  0x8c   : > { %1070 = vperm.xlu0 %1775, %v2214_v40  }
  0x8d   : > { %732 = vperm.xlu1 %1767, %v291_v19   ;;  %v2316_v19 = vrot.slane %v301_v61, %v2285_v63 }
  0x8f   : > { %3156 = vst [vmem:[#allocation10_spill] sm:$0xff] %v2316_v19 }
  0x90   : > { %1778 = vset.pattern.permute.xlu0 %v3112_v11 }
  0x91   : > { %742 = vperm.xlu1 %1767, %v293_v20   ;;  %1118 = vperm.xlu0 %1778, %v2214_v40  }
  0x95   : > { %911 = vperm.xlu1 %1767, %v2147_v17   ;;  %1781 = vset.pattern.permute.xlu0 %v3109_v13 }
  0x96   : > { %v2170_v21 = vpop.permute.xlu1 %393  ;;  %v2172_v22 = vpop.permute.xlu0 %352  ;;  %1166 = vperm.xlu0 %1781, %v2214_v40  }
  0x99   : > { %1768 = vset.pattern.permute.xlu1 %v1914_v1 }
  0x9a   : > { %v2175_v23 = vpop.permute.xlu1 %397  ;;  %v2177_v24 = vpop.permute.xlu0 %357  ;;  %954 = vperm.xlu1 %1768, %v2147_v17   ;;  %1786 = vset.pattern.permute.xlu0 %v3110_v14 }
  0x9b   : > { %1262 = vperm.xlu0 %1786, %v2214_v40  }
  0x9e   : > { %1769 = vset.pattern.permute.xlu1 %v1916_v4 }
  0x9f   : > { %v2181_v25 = vpop.permute.xlu1 %441  ;;  %v2183_v26 = vpop.permute.xlu0 %437  ;;  %998 = vperm.xlu1 %1769, %v2214_v40   ;;  %1787 = vset.pattern.permute.xlu0 %v3115_v12 }
  0xa0   : > { %1214 = vperm.xlu0 %1787, %v2214_v40  }
  0xa3   : > { %v2185_v27 = vpop.permute.xlu0 %322  ;;  %v2187_v28 = vpop.permute.xlu1 %320  ;;  %1773 = vset.pattern.permute.xlu1 %v1918_v9 }
  0xa4   : > { %1050 = vperm.xlu1 %1773, %v2147_v17   ;;  %1222 = vperm.xlu0 %1787, %v2233_v45  }
  0xa7   : > { %v2189_v29 = vpop.permute.xlu0 %326  ;;  %v2191_v30 = vpop.permute.xlu1 %324 }
  0xa8   : > { %1774 = vset.pattern.permute.xlu1 %v3113_v2  ;;  %v333_v20 = vsel %vm330_vm0, %v2191_v30, %v2187_v28  ;;  %v331_v61 = vsel %vm330_vm0, %v2187_v28, %v2191_v30 }
  0xa9   : > { %916 = vperm.xlu1 %1774, %v2233_v45   ;;  %v346_v2 = vmul.f32 %v2304_v15, %v333_v20 }
  0xab   : > { %v2193_v31 = vpop.permute.xlu0 %366  ;;  %v2195_v32 = vpop.permute.xlu1 %364 }
  0xad   : > { %1776 = vset.pattern.permute.xlu1 %v3116_v10 }
  0xae   : > { %1074 = vperm.xlu1 %1776, %v2147_v17  }
  0xaf   : > { %v2197_v33 = vpop.permute.xlu0 %370  ;;  %v2199_v34 = vpop.permute.xlu1 %368 }
  0xb0   : > { %v373_v54 = vsel %vm372_vm1, %v2195_v32, %v2199_v34  ;;  %v375_v57 = vsel %vm372_vm1, %v2199_v34, %v2195_v32  ;;  %v332_v32 = vsel %vm330_vm0, %v2185_v27, %v2189_v29 }
  0xb1   : > { %v388_v12 = vmul.f32 %v2307_v16, %v375_v57  ;;  %v389_v10 = vmul.f32 %v2310_v18, %v373_v54 }
  0xb2   : > { %1777 = vset.pattern.permute.xlu1 %v1916_v4  ;;  %v1623_v4 = vld [vmem:[%s3105_s6 + $0x3] ss:$8 sm:$0x3] }
  0xb3   : > { %v2203_v36 = vpop.permute.xlu0 %485  ;;  %v2205_v37 = vpop.permute.xlu1 %481  ;;  %1006 = vperm.xlu1 %1777, %v2233_v45   ;;  %v2359_v34 = vrot.slane %v1623_v4, %v2285_v63 }
  0xb7   : > { %v2207_v38 = vpop.permute.xlu0 %412  ;;  %v2209_v39 = vpop.permute.xlu1 %408  ;;  %1779 = vset.pattern.permute.xlu1 %v3112_v11  ;;  %v334_v11 = vsel %vm330_vm0, %v2189_v29, %v2185_v27  ;;  %v376_v27 = vsel %vm372_vm1, %v2197_v33, %v2193_v31 }
  0xb8   : > { %1122 = vperm.xlu1 %1779, %v2147_v17   ;;  %v417_v28 = vsel %vm416_vm2, %v2209_v39, %v2207_v38  ;;  %v419_v30 = vsel %vm416_vm2, %v2207_v38, %v2209_v39  ;;  %v1624_v38 = vld [vmem:[%s3105_s6 + $0x4] ss:$8 sm:$0x3]  ;;  %v3158_v39 = vmov 4   ;;  %v348_v57 = vmul.f32 %v2304_v15, %v334_v11 }
  0xb9   : > { %v432_v29 = vmul.f32 %v2336_v0, %v419_v30  ;;  %v433_v20 = vmul.f32 %v2339_v35, %v417_v28  ;;  %v2401_v30 = vrot.slane %v1624_v38, %v2282_v62  ;;  %v2404_v28 = vrot.slane %v1624_v38, %v2285_v63  ;;  %v1625_v11 = vld [vmem:[%s3105_s6 + $0x5] ss:$8 sm:$0x3] }
  0xbb   : > { %v2216_v41 = vpop.permute.xlu0 %497  ;;  %v2218_v42 = vpop.permute.xlu1 %410  ;;  %v445_v15 = vmul.f32 %v2183_v26, %v433_v20 }
  0xbc   : > { %1780 = vset.pattern.permute.xlu1 %v1918_v9 }
  0xbd   : > { %1054 = vperm.xlu1 %1780, %v2233_v45  }
  0xbf   : > { %v2222_v43 = vpop.permute.xlu0 %454  ;;  %v2224_v44 = vpop.permute.xlu1 %414 }
  0xc1   : > { %1782 = vset.pattern.permute.xlu1 %v3109_v13  ;;  %v2342_v13 = vrot.slane %v1623_v4, %v2282_v62  ;;  %v347_v4 = vmul.f32 %v2316_v19, %v331_v61  ;;  %v349_v61 = vmul.f32 %v2316_v19, %v332_v32 }
  0xc2   : > { %1170 = vperm.xlu1 %1782, %v2147_v17  }
  0xc3   : > { %v2235_v46 = vpop.permute.xlu0 %458  ;;  %v2237_v47 = vpop.permute.xlu1 %501 }
  0xc6   : > { %1783 = vset.pattern.permute.xlu1 %v3158_v39  ;;  %v360_v39 = vmul.f32 %v2172_v22, %v346_v2 }
  0xc7   : > { %v2242_v48 = vpop.permute.xlu0 %545  ;;  %v2244_v49 = vpop.permute.xlu1 %452  ;;  %1078 = vperm.xlu1 %1783, %v2233_v45  }
  0xc8   : > { %3151 = vst [vmem:[#allocation5_spill] sm:$0xff] %v2242_v48  ;;  %v400_v48 = vmul.f32 %v2170_v21, %v388_v12  ;;  %v3161_v12 = vmov 0  }
  0xc9   : > { %1790 = vset.pattern.permute.xlu0 %v3161_v12 }
  0xca   : > { %906 = vperm.xlu0 %1790, %v2214_v40  }
  0xcb   : > { %v2249_v50 = vpop.permute.xlu0 %512  ;;  %v2251_v51 = vpop.permute.xlu1 %456 }
  0xcc   : > { %v461_v54 = vsel %vm460_vm3, %v2244_v49, %v2251_v51 }
  0xcd   : > { %v477_v2 = vmul.f32 %v2359_v34, %v461_v54  ;;  %v2434_v54 = vrot.slane %v1625_v11, %v2285_v63 }
  0xcf   : > { %v2255_v52 = vpop.permute.xlu0 %516  ;;  %v2257_v53 = vpop.permute.xlu1 %541 }
  0xd3   : > { %v2262_v55 = vpop.permute.xlu0 %629 }
  0xd4   : > { %v2265_v56 = vpop.permute.xlu1 %585 }
  0xd7   : > { %v2270_v58 = vpop.permute.xlu0 %558 }
  0xd8   : > { %v2274_v60 = vpop.permute.xlu1 %589 }
  0xd9   : > { %3152 = vst [vmem:[#allocation6_spill] sm:$0xff] %v2274_v60  ;;  %v390_v60 = vmul.f32 %v2307_v16, %v376_v27  ;;  %v3160_v27 = vmov 7  }
  0xda   : > { %1784 = vset.pattern.permute.xlu1 %v3160_v27 }
  0xdb   : > { %v2300_v9 = vpop.permute.xlu0 %562  ;;  %1218 = vperm.xlu1 %1784, %v2147_v17  }
  0xdc   : > { %v2292_v1 = vpop.permute.xlu1 %514 }
  0xdf   : > { %v2361_v3 = vpop.permute.xlu0 %677 }
  0xe0   : > { %v2344_v14 = vpop.permute.xlu1 %518  ;;  %3157 = vst [vmem:[#allocation11_spill] sm:$0xff] %v2361_v3  ;;  %v374_v3 = vsel %vm372_vm1, %v2193_v31, %v2197_v33  ;;  %v463_v31 = vsel %vm460_vm3, %v2251_v51, %v2244_v49  ;;  %v401_v49 = vmul.f32 %v2170_v21, %v389_v10  ;;  %v1627_v51 = vld [vmem:[%s3105_s6 + $0x7] ss:$8 sm:$0x3]  ;;  %v361_v10 = vmul.f32 %v2172_v22, %v347_v4 }
  0xe1   : > { %v391_v32 = vmul.f32 %v2310_v18, %v374_v3  ;;  %v476_v38 = vmul.f32 %v2342_v13, %v463_v31  ;;  %v444_v21 = vmul.f32 %v2183_v26, %v432_v29  ;;  %v2431_v3 = vrot.slane %v1625_v11, %v2282_v62 }
  0xe2   : > { %v2437_v22 = vrot.slane %v1627_v51, %v2282_v62  ;;  %v362_v26 = vmul.f32 %v2177_v24, %v348_v57  ;;  %v363_v4 = vmul.f32 %v2177_v24, %v349_v61  ;;  %v404_v29 = vadd.f32 %v400_v48, %v360_v39 }
  0xe3   : > { %v2419_v19 = vpop.permute.xlu0 %604  ;;  %v405_v20 = vadd.f32 %v401_v49, %v361_v10  ;;  %v402_v31 = vmul.f32 %v2175_v23, %v390_v60  ;;  %v403_v40 = vmul.f32 %v2175_v23, %v391_v32  ;;  %v488_v27 = vmul.f32 %v2205_v37, %v476_v38 }
  0xe4   : > { %v2396_v33 = vpop.permute.xlu1 %633  ;;  %v489_v18 = vmul.f32 %v2205_v37, %v477_v2  ;;  %v448_v11 = vadd.f32 %v444_v21, %v404_v29  ;;  %v521_v57 = vsel %vm520_vm4, %v2249_v50, %v2255_v52  ;;  %v523_v24 = vsel %vm520_vm4, %v2255_v52, %v2249_v50 }
  0xe5   : > { %3159 = vst [vmem:[#allocation12_spill] sm:$0xff] %v2396_v33  ;;  %v449_v33 = vadd.f32 %v445_v15, %v405_v20  ;;  %v3162_v23 = vmov 5   ;;  %v418_v37 = vsel %vm416_vm2, %v2218_v42, %v2224_v44  ;;  %v420_v60 = vsel %vm416_vm2, %v2224_v44, %v2218_v42 }
  0xe6   : > { %1785 = vset.pattern.permute.xlu1 %v3162_v23  ;;  %v462_v15 = vsel %vm460_vm3, %v2222_v43, %v2235_v46  ;;  %v464_v50 = vsel %vm460_vm3, %v2235_v46, %v2222_v43  ;;  %v504_v61 = vmul.f32 %v2216_v41, %v2051_v6  ;;  %v505_v39 = vmul.f32 %v2216_v41, %v2059_v8  ;;  %v1626_v46 = vld [vmem:[%s3105_s6 + $0x6] ss:$8 sm:$0x3] }
  0xe7   : > { %v645_v52 = vpop.permute.xlu0 %644  ;;  %1126 = vperm.xlu1 %1785, %v2233_v45   ;;  %v492_v49 = vadd.f32 %v488_v27, %v448_v11  ;;  %v493_v32 = vadd.f32 %v489_v18, %v449_v33  ;;  %v536_v38 = vmul.f32 %v2401_v30, %v521_v57  ;;  %v537_v43 = vmul.f32 %v2404_v28, %v523_v24 }
  0xe8   : > { %v557_v16 = vpop.permute.xlu1 %556  ;;  %v434_v6 = vmul.f32 %v2336_v0, %v420_v60  ;;  %v435_v8 = vmul.f32 %v2339_v35, %v418_v37  ;;  %v478_v41 = vmul.f32 %v2342_v13, %v464_v50  ;;  %v479_v2 = vmul.f32 %v2359_v34, %v462_v15 }
  0xe9   : > { %v2492_v33 = vrot.slane %v1627_v51, %v2285_v63  ;;  %v3163_v21 = vmov 8   ;;  %v406_v29 = vadd.f32 %v402_v31, %v362_v26  ;;  %v407_v20 = vadd.f32 %v403_v40, %v363_v4 }
  0xea   : > { %v2497_v27 = vrot.slane %v1626_v46, %v2282_v62  ;;  %v2500_v11 = vrot.slane %v1626_v46, %v2285_v63  ;;  %v509_v57 = vadd.f32 %v505_v39, %v493_v32  ;;  %v508_v24 = vadd.f32 %v504_v61, %v492_v49 }
  0xeb   : > { %1788 = vset.pattern.permute.xlu1 %v3163_v21  ;;  %v549_v51 = vmul.f32 %v2257_v53, %v537_v43  ;;  %v649_v23 = vpop.permute.xlu0 %648  ;;  %v446_v37 = vmul.f32 %v2181_v25, %v434_v6  ;;  %v447_v26 = vmul.f32 %v2181_v25, %v435_v8  ;;  %v490_v4 = vmul.f32 %v2203_v36, %v478_v41 }
  0xec   : > { %v561_v48 = vpop.permute.xlu1 %560  ;;  %1266 = vperm.xlu1 %1788, %v2147_v17   ;;  %v491_v62 = vmul.f32 %v2203_v36, %v479_v2  ;;  %v653_v25 = vsel %vm652_vm6, %v645_v52, %v649_v23  ;;  %v655_v60 = vsel %vm652_vm6, %v649_v23, %v645_v52  ;;  %v3164_v50 = vmov 6  }
  0xed   : > { %v565_v42 = vsel %vm564_vm5, %v557_v16, %v561_v48  ;;  %v567_v44 = vsel %vm564_vm5, %v561_v48, %v557_v16  ;;  %v548_v48 = vmul.f32 %v2257_v53, %v536_v38  ;;  %v553_v61 = vadd.f32 %v549_v51, %v509_v57 }
  0xee   : > { %v580_v16 = vmul.f32 %v2431_v3, %v565_v42  ;;  %v581_v18 = vmul.f32 %v2434_v54, %v567_v44  ;;  %v522_v39 = vsel %vm520_vm4, %v2292_v1, %v2344_v14  ;;  %v450_v52 = vadd.f32 %v446_v37, %v406_v29 }
  0xef   : > { %v451_v42 = vadd.f32 %v447_v26, %v407_v20  ;;  %v668_v38 = vmul.f32 %v2437_v22, %v653_v25  ;;  %v669_v43 = vmul.f32 %v2492_v33, %v655_v60  ;;  %v538_v8 = vmul.f32 %v2401_v30, %v522_v39 }
  0xf0   : > { %v674_v10 = vpop.permute.xlu1 %673  ;;  %v592_v63 = vmul.f32 %v2265_v56, %v580_v16  ;;  %v593_v17 = vmul.f32 %v2265_v56, %v581_v18  ;;  %1789 = vset.pattern.permute.xlu1 %v3164_v50  ;;  %v552_v56 = vadd.f32 %v548_v48, %v508_v24  ;;  %v507_v18 = vmul.f32 %v2237_v47, %v2057_v7  ;;  %v3165_v7 = vld [vmem:[#allocation5_spill] sm:$0xff] }
  0xf1   : > { %1174 = vperm.xlu1 %1789, %v2233_v45   ;;  %v566_v29 = vsel %vm564_vm5, %v2270_v58, %v2300_v9  ;;  %v568_v20 = vsel %vm564_vm5, %v2300_v9, %v2270_v58  ;;  %v680_v24 = vmul.f32 %v674_v10, %v668_v38  ;;  %v681_v48 = vmul.f32 %v674_v10, %v669_v43 }
  0xf2   : > { %v596_v46 = vadd.f32 %v592_v63, %v552_v56  ;;  %v597_v6 = vadd.f32 %v593_v17, %v553_v61  ;;  %v583_v58 = vmul.f32 %v2434_v54, %v568_v20  ;;  %v691_v63 = vpop.permute.xlu0 %690  ;;  %v3167_v56 = vld [vmem:[#allocation12_spill] sm:$0xff] }
  0xf4   : > { %v601_v31 = vpop.permute.xlu1 %600 }
  0xf5   : > { %v609_v40 = vsel %vm608_vm7, %v601_v31, %v2419_v19  ;;  %v611_v53 = vsel %vm608_vm7, %v2419_v19, %v601_v31  ;;  %v524_v19 = vsel %vm520_vm4, %v2344_v14, %v2292_v1  ;;  %v494_v14 = vadd.f32 %v490_v4, %v450_v52  ;;  %1791 = vset.pattern.permute.xlu1 %v3161_v12 }
  0xf6   : > { %v624_v36 = vmul.f32 %v2497_v27, %v609_v40  ;;  %v625_v15 = vmul.f32 %v2500_v11, %v611_v53  ;;  %v539_v41 = vmul.f32 %v2404_v28, %v524_v19  ;;  %v495_v1 = vadd.f32 %v491_v62, %v451_v42 }
  0xf7   : > { %v582_v31 = vmul.f32 %v2431_v3, %v566_v29 }
  0xf8   : > { %v636_v44 = vmul.f32 %v2262_v55, %v624_v36  ;;  %v637_v49 = vmul.f32 %v2262_v55, %v625_v15  ;;  %v603_v32 = vpop.permute.xlu1 %602  ;;  %v506_v55 = vmul.f32 %v2237_v47, %v2049_v5  ;;  %v550_v47 = vmul.f32 %v3165_v7, %v538_v8  ;;  %v3166_v36 = vld [vmem:[#allocation6_spill] sm:$0xff] }
  0xf9   : > { %v551_v23 = vmul.f32 %v3165_v7, %v539_v41  ;;  %v511_v26 = vadd.f32 %v507_v18, %v495_v1  ;;  %v594_v15 = vmul.f32 %v3166_v36, %v582_v31  ;;  %v595_v50 = vmul.f32 %v3166_v36, %v583_v58 }
  0xfa   : > { %v640_v2 = vadd.f32 %v636_v44, %v596_v46  ;;  %v641_v16 = vadd.f32 %v637_v49, %v597_v6  ;;  %v510_v37 = vadd.f32 %v506_v55, %v494_v14  ;;  %v3168_v6 = vld [vmem:[#allocation11_spill] sm:$0xff]  ;;  %v3169_v36 = vmov 0.0  }
  0xfb   : > { %v555_v53 = vadd.f32 %v551_v23, %v511_v26 }
  0xfc   : > { %v607_v57 = vpop.permute.xlu1 %606  ;;  %v684_v4 = vadd.f32 %v680_v24, %v640_v2  ;;  %v685_v62 = vadd.f32 %v681_v48, %v641_v16  ;;  %v554_v40 = vadd.f32 %v550_v47, %v510_v37 }
  0xfd   : > { %v610_v51 = vsel %vm608_vm7, %v603_v32, %v607_v57  ;;  %v612_v5 = vsel %vm608_vm7, %v607_v57, %v603_v32  ;;  %v599_v38 = vadd.f32 %v595_v50, %v555_v53  ;;  %v277_v53 = vld [vmem:[%s3101_s2] sm:$0xff]  ;;  %v294_v50 = vld [vmem:[%s3104_s5 + $0x28] sm:$0xff] }
  0xfe   : > { %v626_v9 = vmul.f32 %v2497_v27, %v610_v51  ;;  %v627_v10 = vmul.f32 %v2500_v11, %v612_v5  ;;  %v698_v25 = vadd.f32 %v691_v63, %v684_v4  ;;  %v699_v60 = vadd.f32 %v691_v63, %v685_v62  ;;  %1287 = vperm.xlu0 %1790, %v294_v50  }
  0xff   : > { %v598_v32 = vadd.f32 %v594_v15, %v554_v40  ;;  %v278_v15 = vld [vmem:[%s3101_s2 + $0x8] sm:$0xff] }
 0x100   : > { %v647_v17 = vpop.permute.xlu1 %646  ;;  %v638_v61 = vmul.f32 %v3167_v56, %v626_v9  ;;  %v639_v39 = vmul.f32 %v3167_v56, %v627_v10  ;;  %v1628_v43 = vmul.f32 -1.442695, %v698_v25  ;;  %v1629_v46 = vmul.f32 -1.442695, %v699_v60  ;;  %v738_v56 = vpop.permute.xlu0 %737 }
 0x102   : > { %v642_v14 = vadd.f32 %v638_v61, %v598_v32  ;;  %v643_v1 = vadd.f32 %v639_v39, %v599_v38  ;;  %1794 = vpow2.f32 %v1628_v43 }
 0x103   : > { %1796 = vpow2.f32 %v1629_v46 }
 0x104   : > { %v651_v19 = vpop.permute.xlu1 %650  ;;  %v2594_v38 = vpop.permute.xlu0 %1002 }
 0x105   : > { %v654_v52 = vsel %vm652_vm6, %v647_v17, %v651_v19  ;;  %v656_v42 = vsel %vm652_vm6, %v651_v19, %v647_v17 }
 0x106   : > { %v670_v44 = vmul.f32 %v2437_v22, %v654_v52  ;;  %v671_v49 = vmul.f32 %v2492_v33, %v656_v42 }
 0x108   : > { %v682_v8 = vmul.f32 %v3168_v6, %v670_v44  ;;  %v683_v41 = vmul.f32 %v3168_v6, %v671_v49  ;;  %v696_v55 = vpop.permute.xlu1 %695 }
 0x10a   : > { %v686_v2 = vadd.f32 %v682_v8, %v642_v14  ;;  %v687_v16 = vadd.f32 %v683_v41, %v643_v1  ;;  %v2596_v8 = vpop.permute.xlu0 %1046 }
 0x10c   : > { %v700_v18 = vadd.f32 %v696_v55, %v686_v2  ;;  %v701_v29 = vadd.f32 %v696_v55, %v687_v16  ;;  %v1795_v24 = vpop.eup %1794  ;;  %v733_v61 = vpop.permute.xlu1 %732 }
 0x10d   : > { %v1797_v48 = vpop.eup %1796  ;;  %v714_v51 = vadd.f32 1.0, %v1795_v24 }
 0x10e   : > { %v1630_v20 = vmul.f32 -1.442695, %v700_v18  ;;  %v1631_v57 = vmul.f32 -1.442695, %v701_v29  ;;  %v715_v5 = vadd.f32 1.0, %v1797_v48  ;;  %v2598_v1 = vpop.permute.xlu0 %950 }
 0x110   : > { %1798 = vpow2.f32 %v1630_v20 }
 0x111   : > { %1800 = vpow2.f32 %v1631_v57 }
 0x112   : > { %1802 = vrcp.f32 %v714_v51  ;;  %v2600_v55 = vpop.permute.xlu0 %958 }
 0x113   : > { %1804 = vrcp.f32 %v715_v5  ;;  %3170 = vst [vmem:[#allocation5_spill] sm:$0xff] %v2600_v55 }
 0x116   : > { %v1071_v20 = vpop.permute.xlu0 %1070 }
 0x11a   : > { %v1799_v7 = vpop.eup %1798 }
 0x11b   : > { %v1801_v47 = vpop.eup %1800  ;;  %v716_v23 = vadd.f32 1.0, %v1799_v7 }
 0x11c   : > { %v717_v37 = vadd.f32 1.0, %v1801_v47  ;;  %v1803_v26 = vpop.eup %1802 }
 0x11d   : > { %1806 = vrcp.f32 %v716_v23  ;;  %v1805_v4 = vpop.eup %1804  ;;  %v726_v58 = vmul.f32 %v1803_v26, %v698_v25  ;;  %v279_v25 = vld [vmem:[%s3101_s2 + $0x10] sm:$0xff] }
 0x11e   : > { %1808 = vrcp.f32 %v717_v37  ;;  %v727_v10 = vmul.f32 %v1805_v4, %v699_v60  ;;  %v295_v60 = vld [vmem:[%s3104_s5 + $0x30] sm:$0xff]  ;;  %v743_v37 = vpop.permute.xlu1 %742 }
 0x11f   : > { %1292 = vperm.xlu1 %1791, %v295_v60  }
 0x123   : > { %1792 = vset.pattern.permute.xlu1 %v3163_v21 }
 0x124   : > { %1270 = vperm.xlu1 %1792, %v2233_v45  }
 0x127   : > { %v1807_v62 = vpop.eup %1806 }
 0x128   : > { %v1809_v31 = vpop.eup %1808  ;;  %v728_v9 = vmul.f32 %v1807_v62, %v700_v18  ;;  %1793 = vset.pattern.permute.xlu1 %v3161_v12  ;;  %v2617_v62 = vpop.permute.xlu1 %911 }
 0x129   : > { %v729_v63 = vmul.f32 %v1809_v31, %v701_v29 }
 0x12a   : > { %v1684_v17 = vpack.c.bf16 %v728_v9, %v726_v58 }
 0x12b   : > { %v1682_v40 = vpack.c.bf16 %v729_v63, %v727_v10 }
 0x12c   : > { %v2622_v58 = vpop.permute.xlu1 %954 }
 0x12d   : > { %1683 = vmatprep.subr.bf16.mxu0 %v1682_v40 }
 0x12e   : > { %1685 = vmatpush1.bf16.msra.mxu0 %v1684_v17 }
 0x130   : > { %v2630_v40 = vpop.permute.xlu1 %998 }
 0x131   : > { %1632 = vmatmul.mubr.msk.f32.vlgmr.msra.gmra.mrb[0].mxu0 %vm745_vm8, %v277_v53 }
 0x132   : > { %825 = vmatprep.mubr.f32.mxu0 %v3169_v36 }
 0x135   : > { %1633 = vmatmul.mubr.msk.f32.gmra.mrb[2].mxu0 %vm745_vm8, %v278_v15  ;;  %v2635_v15 = vpop.permute.xlu1 %1050 }
 0x136   : > { %831 = vmatprep.mubr.f32.mxu0 %v3169_v36 }
 0x139   : > { %1634 = vmatmul.mubr.msk.f32.gmra.mrb[4].mxu0 %vm745_vm8, %v279_v25  ;;  %v2643_v50 = vpop.permute.xlu1 %916 }
 0x13a   : > { %3173 = vst [vmem:[#allocation6_spill] sm:$0xff] %v2643_v50 }
 0x204   : > { %v821_v39 = vpop.f32.mrb[0].mxu0 }
 0x205   : > { %v822_v19 = vadd.f32 %v821_v39, %v733_v61  ;;  %v823_v52 = vpop.f32.mrb[1].mxu0 }
 0x206   : > { %v824_v42 = vadd.f32 %v823_v52, %v733_v61 }
 0x207   : > { %v1635_v44 = vmul.f32 -1.442695, %v822_v19 }
 0x208   : > { %v1636_v49 = vmul.f32 -1.442695, %v824_v42  ;;  %v827_v32 = vpop.f32.mrb[2].mxu0 }
 0x209   : > { %1810 = vpow2.f32 %v1635_v44  ;;  %v828_v21 = vadd.f32 %v827_v32, %v738_v56  ;;  %v829_v43 = vpop.f32.mrb[3].mxu0 }
 0x20a   : > { %1812 = vpow2.f32 %v1636_v49  ;;  %v830_v7 = vadd.f32 %v829_v43, %v738_v56 }
 0x20b   : > { %v1637_v46 = vmul.f32 -1.442695, %v828_v21 }
 0x20c   : > { %v833_v6 = vpop.f32.mrb[4].mxu0  ;;  %v1638_v23 = vmul.f32 -1.442695, %v830_v7 }
 0x20d   : > { %v835_v45 = vpop.f32.mrb[5].mxu0  ;;  %1814 = vpow2.f32 %v1637_v46  ;;  %v834_v4 = vadd.f32 %v833_v6, %v743_v37  ;;  %v2694_v6 = vpop.permute.xlu0 %1118 }
 0x20e   : > { %v836_v9 = vadd.f32 %v835_v45, %v743_v37 }
 0x20f   : > { %v1639_v31 = vmul.f32 -1.442695, %v834_v4 }
 0x210   : > { %v1640_v63 = vmul.f32 -1.442695, %v836_v9 }
 0x213   : > { %v1811_v12 = vpop.eup %1810 }
 0x214   : > { %v1813_v41 = vpop.eup %1812  ;;  %v856_v14 = vadd.f32 1.0, %v1811_v12 }
 0x215   : > { %v857_v2 = vadd.f32 1.0, %v1813_v41  ;;  %v2704_v41 = vpop.permute.xlu0 %1166 }
 0x216   : > { %1816 = vrcp.f32 %v856_v14  ;;  %v296_v14 = vld [vmem:[%s3104_s5 + $0x38] sm:$0xff] }
 0x217   : > { %1818 = vrcp.f32 %v857_v2  ;;  %v1815_v16 = vpop.eup %1814 }
 0x218   : > { %v858_v18 = vadd.f32 1.0, %v1815_v16 }
 0x219   : > { %v2717_v16 = vpop.permute.xlu0 %1262 }
 0x21a   : > { %1820 = vrcp.f32 %v858_v18 }
 0x21b   : > { %1822 = vpow2.f32 %v1638_v23 }
 0x21c   : > { %1824 = vpow2.f32 %v1639_v31 }
 0x21d   : > { %1826 = vpow2.f32 %v1640_v63 }
 0x220   : > { %v1817_v29 = vpop.eup %1816 }
 0x221   : > { %v1819_v57 = vpop.eup %1818  ;;  %v874_v24 = vmul.f32 %v1817_v29, %v822_v19  ;;  %v2650_v19 = vpop.permute.xlu1 %1074 }
 0x222   : > { %v875_v48 = vmul.f32 %v1819_v57, %v824_v42  ;;  %v2723_v29 = vpop.permute.xlu0 %1214 }
 0x223   : > { %v2602_v51 = vmul.f32 %v1071_v20, %v874_v24  ;;  %925 = vrot.lane.b32.xlu0 %v874_v24, %s1919_s23  ;;  %880 = vrot.lane.b32.xlu1 %v874_v24, %s1917_s22 }
 0x224   : > { %v2606_v5 = vmul.f32 %v1071_v20, %v875_v48  ;;  %v1821_v47 = vpop.eup %1820 }
 0x225   : > { %v2612_v26 = vmul.f32 %v1821_v47, %v828_v21  ;;  %v1823_v10 = vpop.eup %1822  ;;  %v2660_v44 = vpop.permute.xlu1 %1006 }
 0x226   : > { %v859_v17 = vadd.f32 1.0, %v1823_v10  ;;  %v1825_v53 = vpop.eup %1824  ;;  %3175 = vst [vmem:[#allocation11_spill] sm:$0xff] %v2660_v44  ;;  %v2731_v57 = vpop.permute.xlu0 %1222 }
 0x227   : > { %1021 = vrot.lane.b32.xlu0 %v874_v24, %s1922_s8  ;;  %973 = vrot.lane.b32.xlu1 %v874_v24, %s1920_s29  ;;  %v860_v25 = vadd.f32 1.0, %v1825_v53  ;;  %v1827_v60 = vpop.eup %1826  ;;  %3184 = vst [vmem:[#allocation21_spill] sm:$0xff] %v2731_v57  ;;  %v3187_v57 = vld [vmem:[#allocation8_spill] sm:$0xff] }
 0x228   : > { %1828 = vrcp.f32 %v859_v17  ;;  %v861_v61 = vadd.f32 1.0, %v1827_v60 }
 0x229   : > { %1830 = vrcp.f32 %v860_v25  ;;  %v2666_v32 = vpop.permute.xlu1 %1122 }
 0x22a   : > { %1832 = vrcp.f32 %v861_v61 }
 0x22b   : > { %1093 = vrot.lane.b32.xlu0 %v874_v24, %s1924_s9  ;;  %1237 = vrot.lane.b32.xlu1 %v874_v24, %s1930_s15 }
 0x22d   : > { %v2678_v43 = vpop.permute.xlu1 %1054 }
 0x22e   : > { %3177 = vst [vmem:[#allocation14_spill] sm:$0xff] %v2678_v43  ;;  %v3190_v43 = vld [vmem:[#allocation10_spill] sm:$0xff] }
 0x22f   : > { %1141 = vrot.lane.b32.xlu0 %v874_v24, %s3171_s13  ;;  %882 = vrot.lane.b32.xlu1 %v2612_v26, %s1917_s22 }
 0x231   : > { %v2684_v46 = vpop.permute.xlu1 %1170 }
 0x232   : > { %v1829_v56 = vpop.eup %1828  ;;  %3178 = vst [vmem:[#allocation15_spill] sm:$0xff] %v2684_v46 }
 0x233   : > { %1189 = vrot.lane.b32.xlu0 %v874_v24, %s3172_s14  ;;  %927 = vrot.lane.b32.xlu1 %v2612_v26, %s1919_s23  ;;  %v2648_v39 = vmul.f32 %v1829_v56, %v830_v7  ;;  %v1831_v52 = vpop.eup %1830 }
 0x234   : > { %v2658_v42 = vmul.f32 %v1831_v52, %v834_v4  ;;  %v1833_v49 = vpop.eup %1832 }
 0x235   : > { %v2672_v21 = vmul.f32 %v1833_v49, %v836_v9  ;;  %v2696_v45 = vpop.permute.xlu1 %1078 }
 0x236   : > { %3174 = vst [vmem:[#allocation12_spill] sm:$0xff] %v2658_v42  ;;  %3179 = vst [vmem:[#allocation16_spill] sm:$0xff] %v2696_v45  ;;  %v3189_v45 = vld [vmem:[#allocation7_spill] sm:$0xff] }
 0x237   : > { %886 = vrot.lane.b32.xlu0 %v875_v48, %s1917_s22  ;;  %975 = vrot.lane.b32.xlu1 %v2612_v26, %s1920_s29  ;;  %3176 = vst [vmem:[#allocation13_spill] sm:$0xff] %v2672_v21 }
 0x239   : > { %v2702_v12 = vpop.permute.xlu1 %1218 }
 0x23a   : > { %3180 = vst [vmem:[#allocation17_spill] sm:$0xff] %v2702_v12 }
 0x23b   : > { %931 = vrot.lane.b32.xlu0 %v875_v48, %s1919_s23  ;;  %1023 = vrot.lane.b32.xlu1 %v2612_v26, %s1922_s8 }
 0x23d   : > { %v2715_v2 = vpop.permute.xlu1 %1126 }
 0x23e   : > { %3181 = vst [vmem:[#allocation18_spill] sm:$0xff] %v2715_v2  ;;  %v3188_v2 = vld [vmem:[#allocation9_spill] sm:$0xff] }
 0x23f   : > { %979 = vrot.lane.b32.xlu0 %v875_v48, %s1920_s29  ;;  %1095 = vrot.lane.b32.xlu1 %v2612_v26, %s1924_s9 }
 0x241   : > { %v2721_v18 = vpop.permute.xlu1 %1266 }
 0x242   : > { %3182 = vst [vmem:[#allocation19_spill] sm:$0xff] %v2721_v18 }
 0x243   : > { %1027 = vrot.lane.b32.xlu0 %v875_v48, %s1922_s8  ;;  %1143 = vrot.lane.b32.xlu1 %v2612_v26, %s3171_s13 }
 0x245   : > { %v2729_v20 = vpop.permute.xlu1 %1174 }
 0x246   : > { %3183 = vst [vmem:[#allocation20_spill] sm:$0xff] %v2729_v20 }
 0x247   : > { %1099 = vrot.lane.b32.xlu0 %v875_v48, %s1924_s9  ;;  %1191 = vrot.lane.b32.xlu1 %v2612_v26, %s3172_s14 }
 0x249   : > { %v2735_v24 = vpop.permute.xlu1 %1292 }
 0x24a   : > { %3185 = vst [vmem:[#allocation22_spill] sm:$0xff] %v2735_v24 }
 0x24b   : > { %1147 = vrot.lane.b32.xlu0 %v875_v48, %s3171_s13  ;;  %1239 = vrot.lane.b32.xlu1 %v2612_v26, %s1930_s15 }
 0x24d   : > { %v2741_v47 = vpop.permute.xlu1 %1270 }
 0x24e   : > { %3186 = vst [vmem:[#allocation23_spill] sm:$0xff] %v2741_v47 }
 0x24f   : > { %1195 = vrot.lane.b32.xlu0 %v875_v48, %s3172_s14  ;;  %888 = vrot.lane.b32.xlu1 %v2648_v39, %s1917_s22 }
 0x253   : > { %1243 = vrot.lane.b32.xlu0 %v875_v48, %s1930_s15  ;;  %933 = vrot.lane.b32.xlu1 %v2648_v39, %s1919_s23  ;;  %v907_v48 = vpop.permute.xlu0 %906 }
 0x257   : > { %1097 = vrot.lane.b32.xlu0 %v2658_v42, %s1924_s9  ;;  %981 = vrot.lane.b32.xlu1 %v2648_v39, %s1920_s29  ;;  %v2739_v7 = vpop.permute.xlu0 %1287 }
 0x25b   : > { %1193 = vrot.lane.b32.xlu0 %v2658_v42, %s3172_s14  ;;  %1029 = vrot.lane.b32.xlu1 %v2648_v39, %s1922_s8 }
 0x25f   : > { %890 = vrot.lane.b32.xlu0 %v2672_v21, %s1917_s22  ;;  %1101 = vrot.lane.b32.xlu1 %v2648_v39, %s1924_s9 }
 0x263   : > { %935 = vrot.lane.b32.xlu0 %v2672_v21, %s1919_s23  ;;  %1149 = vrot.lane.b32.xlu1 %v2648_v39, %s3171_s13 }
 0x267   : > { %983 = vrot.lane.b32.xlu0 %v2672_v21, %s1920_s29  ;;  %1197 = vrot.lane.b32.xlu1 %v2648_v39, %s3172_s14 }
 0x26b   : > { %1031 = vrot.lane.b32.xlu0 %v2672_v21, %s1922_s8  ;;  %1245 = vrot.lane.b32.xlu1 %v2648_v39, %s1930_s15 }
 0x26f   : > { %1241 = vrot.lane.b32.xlu0 %v2658_v42, %s1930_s15  ;;  %884 = vrot.lane.b32.xlu1 %v2658_v42, %s1917_s22  ;;  %s1854_s22 = sshll.u32 %s1934_s21, 4  ;;  %s1855_s22 = int_to_ptr.vmem [resolvable:$false] %s1854_s22 }
 0x273   : > { %1151 = vrot.lane.b32.xlu0 %v2672_v21, %s3171_s13  ;;  %929 = vrot.lane.b32.xlu1 %v2658_v42, %s1919_s23 }
 0x277   : > { %1297 = vperm.xlu0 %1790, %v296_v14   ;;  %977 = vrot.lane.b32.xlu1 %v2658_v42, %s1920_s29  ;;  %s1856_s29 = scalar_lea.vmem %s1855_s22, 1536 }
 0x27b   : > { %1025 = vrot.lane.b32.xlu1 %v2658_v42, %s1922_s8 }
 0x27f   : > { %1145 = vrot.lane.b32.xlu1 %v2658_v42, %s3171_s13 }
 0x283   : > { %1103 = vrot.lane.b32.xlu1 %v2672_v21, %s1924_s9  ;;  %s269_s9 = sand.u32 1, %s1904_s25  }
 0x284   : > { %s3057_s28 = scalar_lea.sflag [#allocation3], %s269_s9 }
 0x287   : > { %1199 = vrot.lane.b32.xlu1 %v2672_v21, %s3172_s14  ;;  %s3055_s14 = scalar_lea.hbm %s3106_s7, %s1690_s18 }
 0x28b   : > { %1247 = vrot.lane.b32.xlu1 %v2672_v21, %s1930_s15  ;;  %s1689_s15 = smul.u32 48, %s269_s9 }
 0x28d   : > { %s271_s16 = scalar_lea.vmem [#allocation2], %s1689_s15 }
 0x28e   : > { %s1553_s17 = sshll.u32 %s271_s16, 4  ;;  %s3048_s17 = int_to_ptr.vmem [resolvable:$true] %s1553_s17 }
 0x28f   : > { %s1850_s20 = scalar_lea.vmem %s3048_s17, 768  ;;  %p1857_p0 = scmp.lt.s32.totalorder %s3048_s17, %s1855_s22 }
 0x290   : > { %p1851_p11 = scmp.ne.s32.totalorder %s3048_s17, %s1850_s20  ;;  %p1858_p1 = scmp.lt.s32.totalorder %s1856_s29, %s1850_s20 }
 0x292   : > { %p1852_p12 = pnand %p1851_p11, %p2014_p5  ;;  %p1859_p2 = por %p1858_p1, %p1857_p0 }
 0x294   : > { %p1853_p13 = pneg %p1852_p12 }
 0x295   : > { %v926_v23 = vpop.permute.xlu0 %925  ;;  %v881_v37 = vpop.permute.xlu1 %880 }
 0x296   : > { %p1860_p3 = pnand %p1859_p2, %p1853_p13 }
 0x299   : > { %v1022_v4 = vpop.permute.xlu0 %1021  ;;  %v974_v31 = vpop.permute.xlu1 %973 }
 0x29d   : > { %v1094_v9 = vpop.permute.xlu0 %1093  ;;  %v2743_v10 = vpop.permute.xlu1 %1237 }
 0x2a1   : > { %v1142_v63 = vpop.permute.xlu0 %1141  ;;  %v2745_v17 = vpop.permute.xlu1 %882 }
 0x2a5   : > { %v1190_v53 = vpop.permute.xlu0 %1189  ;;  %v2747_v25 = vpop.permute.xlu1 %927 }
 0x2a9   : > { %v887_v60 = vpop.permute.xlu0 %886  ;;  %v2749_v56 = vpop.permute.xlu1 %975 }
 0x2aa   : > { %v892_v49 = vsel %vm330_vm0, %v881_v37, %v887_v60  ;;  %v895_v14 = vsel %vm330_vm0, %v887_v60, %v881_v37 }
 0x2ab   : > { %v898_v42 = vmul.f32 %v895_v14, %v3189_v45  ;;  %v899_v44 = vmul.f32 %v892_v49, %v3190_v43 }
 0x2ad   : > { %v932_v61 = vpop.permute.xlu0 %931  ;;  %v2751_v52 = vpop.permute.xlu1 %1023  ;;  %v920_v14 = vmul.f32 %v907_v48, %v899_v44 }
 0x2ae   : > { %v937_v36 = vsel %vm372_vm1, %v926_v23, %v932_v61  ;;  %v940_v47 = vsel %vm372_vm1, %v932_v61, %v926_v23  ;;  %v919_v61 = vmul.f32 %v907_v48, %v898_v42 }
 0x2af   : > { %v943_v20 = vmul.f32 %v940_v47, %v3187_v57  ;;  %v944_v21 = vmul.f32 %v937_v36, %v3188_v2 }
 0x2b1   : > { %v980_v50 = vpop.permute.xlu0 %979  ;;  %v2765_v55 = vpop.permute.xlu1 %1095  ;;  %v961_v24 = vmul.f32 %v2598_v1, %v943_v20  ;;  %v962_v23 = vmul.f32 %v2598_v1, %v944_v21 }
 0x2b2   : > { %v985_v37 = vsel %vm416_vm2, %v974_v31, %v980_v50  ;;  %v988_v60 = vsel %vm416_vm2, %v980_v50, %v974_v31 }
 0x2b3   : > { %v991_v47 = vmul.f32 %v988_v60, %v2336_v0  ;;  %v992_v36 = vmul.f32 %v985_v37, %v2339_v35  ;;  %v967_v1 = vadd.f32 %v961_v24, %v919_v61  ;;  %v968_v21 = vadd.f32 %v962_v23, %v920_v14 }
 0x2b5   : > { %v1009_v49 = vmul.f32 %v2630_v40, %v991_v47  ;;  %v1010_v18 = vmul.f32 %v2630_v40, %v992_v36  ;;  %v1028_v12 = vpop.permute.xlu0 %1027  ;;  %v2777_v46 = vpop.permute.xlu1 %1143 }
 0x2b6   : > { %v1033_v50 = vsel %vm460_vm3, %v1022_v4, %v1028_v12  ;;  %v1036_v20 = vsel %vm460_vm3, %v1028_v12, %v1022_v4 }
 0x2b7   : > { %v1039_v31 = vmul.f32 %v1036_v20, %v2342_v13  ;;  %v1040_v42 = vmul.f32 %v1033_v50, %v2359_v34  ;;  %v1015_v44 = vadd.f32 %v1009_v49, %v967_v1  ;;  %v1016_v48 = vadd.f32 %v1010_v18, %v968_v21 }
 0x2b9   : > { %v1057_v37 = vmul.f32 %v2596_v8, %v1039_v31  ;;  %v1058_v40 = vmul.f32 %v2596_v8, %v1040_v42  ;;  %v1100_v60 = vpop.permute.xlu0 %1099  ;;  %v2787_v47 = vpop.permute.xlu1 %1191 }
 0x2ba   : > { %v1105_v36 = vsel %vm520_vm4, %v1094_v9, %v1100_v60  ;;  %v1108_v12 = vsel %vm520_vm4, %v1100_v60, %v1094_v9 }
 0x2bb   : > { %v1063_v24 = vadd.f32 %v1057_v37, %v1015_v44  ;;  %v1064_v4 = vadd.f32 %v1058_v40, %v1016_v48  ;;  %v1111_v23 = vmul.f32 %v1105_v36, %v2401_v30  ;;  %v1112_v61 = vmul.f32 %v1108_v12, %v2404_v28 }
 0x2bd   : > { %v1148_v18 = vpop.permute.xlu0 %1147  ;;  %v2795_v14 = vpop.permute.xlu1 %1239  ;;  %v1087_v8 = vadd.f32 %v2602_v51, %v1063_v24  ;;  %v1088_v49 = vadd.f32 %v2606_v5, %v1064_v4  ;;  %v1129_v9 = vmul.f32 %v2694_v6, %v1111_v23  ;;  %v1130_v1 = vmul.f32 %v2694_v6, %v1112_v61 }
 0x2be   : > { %v1153_v50 = vsel %vm564_vm5, %v1142_v63, %v1148_v18  ;;  %v1156_v20 = vsel %vm564_vm5, %v1148_v18, %v1142_v63 }
 0x2bf   : > { %v1159_v21 = vmul.f32 %v1153_v50, %v2431_v3  ;;  %v1160_v31 = vmul.f32 %v1156_v20, %v2434_v54  ;;  %v1135_v37 = vadd.f32 %v1129_v9, %v1087_v8  ;;  %v1136_v40 = vadd.f32 %v1130_v1, %v1088_v49 }
 0x2c1   : > { %v1177_v42 = vmul.f32 %v2704_v41, %v1159_v21  ;;  %v1178_v51 = vmul.f32 %v2704_v41, %v1160_v31  ;;  %v1196_v44 = vpop.permute.xlu0 %1195  ;;  %v889_v5 = vpop.permute.xlu1 %888 }
 0x2c2   : > { %v1201_v48 = vsel %vm608_vm7, %v1190_v53, %v1196_v44  ;;  %v1204_v63 = vsel %vm608_vm7, %v1196_v44, %v1190_v53  ;;  %v896_v36 = vsel %vm330_vm0, %v889_v5, %v2745_v17  ;;  %v893_v53 = vsel %vm330_vm0, %v2745_v17, %v889_v5 }
 0x2c3   : > { %v1207_v6 = vmul.f32 %v1201_v48, %v2497_v27  ;;  %v1208_v60 = vmul.f32 %v1204_v63, %v2500_v11  ;;  %v1183_v12 = vadd.f32 %v1177_v42, %v1135_v37  ;;  %v1184_v41 = vadd.f32 %v1178_v51, %v1136_v40 }
 0x2c4   : > { %v900_v9 = vmul.f32 %v896_v36, %v3189_v45  ;;  %v901_v5 = vmul.f32 %v893_v53, %v3190_v43 }
 0x2c5   : > { %v1225_v24 = vmul.f32 %v2723_v29, %v1207_v6  ;;  %v1226_v4 = vmul.f32 %v2723_v29, %v1208_v60  ;;  %v1244_v23 = vpop.permute.xlu0 %1243  ;;  %v934_v61 = vpop.permute.xlu1 %933 }
 0x2c6   : > { %v1249_v18 = vsel %vm652_vm6, %v2743_v10, %v1244_v23  ;;  %v1252_v8 = vsel %vm652_vm6, %v1244_v23, %v2743_v10  ;;  %v938_v17 = vsel %vm372_vm1, %v2747_v25, %v934_v61  ;;  %v941_v1 = vsel %vm372_vm1, %v934_v61, %v2747_v25 }
 0x2c7   : > { %v1231_v49 = vadd.f32 %v1225_v24, %v1183_v12  ;;  %v1232_v50 = vadd.f32 %v1226_v4, %v1184_v41  ;;  %v1255_v20 = vmul.f32 %v1249_v18, %v2437_v22  ;;  %v1256_v29 = vmul.f32 %v1252_v8, %v2492_v33 }
 0x2c8   : > { %v945_v31 = vmul.f32 %v941_v1, %v3187_v57  ;;  %v946_v42 = vmul.f32 %v938_v17, %v3188_v2 }
 0x2c9   : > { %v1273_v21 = vmul.f32 %v2717_v16, %v1255_v20  ;;  %v1274_v10 = vmul.f32 %v2717_v16, %v1256_v29  ;;  %v2842_v51 = vpop.permute.xlu0 %1097  ;;  %v982_v44 = vpop.permute.xlu1 %981  ;;  %v921_v16 = vmul.f32 %v2617_v62, %v900_v9 }
 0x2ca   : > { %v986_v48 = vsel %vm416_vm2, %v2749_v56, %v982_v44  ;;  %v989_v25 = vsel %vm416_vm2, %v982_v44, %v2749_v56  ;;  %v963_v60 = vmul.f32 %v2622_v58, %v945_v31  ;;  %v964_v36 = vmul.f32 %v2622_v58, %v946_v42 }
 0x2cb   : > { %v1279_v63 = vadd.f32 %v1273_v21, %v1231_v49  ;;  %v1280_v37 = vadd.f32 %v1274_v10, %v1232_v50  ;;  %v993_v40 = vmul.f32 %v989_v25, %v2336_v0  ;;  %v994_v6 = vmul.f32 %v986_v48, %v2339_v35 }
 0x2cc   : > { %v922_v56 = vmul.f32 %v2617_v62, %v901_v5  ;;  %v969_v8 = vadd.f32 %v963_v60, %v921_v16  ;;  %v1084_v48 = vmul.f32 %v2650_v19, %v2648_v39  ;;  %v3191_v39 = vld [vmem:[#allocation15_spill] sm:$0xff] }
 0x2cd   : > { %v1030_v12 = vpop.permute.xlu1 %1029  ;;  %v2857_v41 = vadd.f32 %v2739_v7, %v1279_v63  ;;  %v2860_v24 = vadd.f32 %v2739_v7, %v1280_v37  ;;  %v1011_v4 = vmul.f32 %v2594_v38, %v993_v40  ;;  %v2864_v23 = vpop.permute.xlu0 %1193  ;;  %v1012_v53 = vmul.f32 %v2594_v38, %v994_v6 }
 0x2ce   : > { %v1034_v61 = vsel %vm460_vm3, %v2751_v52, %v1030_v12  ;;  %v1037_v58 = vsel %vm460_vm3, %v1030_v12, %v2751_v52  ;;  %v970_v49 = vadd.f32 %v964_v36, %v922_v56 }
 0x2cf   : > { %v1041_v18 = vmul.f32 %v1037_v58, %v2342_v13  ;;  %v1042_v7 = vmul.f32 %v1034_v61, %v2359_v34  ;;  %v1306_v62 = vadd.f32 %v2860_v24, %v2857_v41  ;;  %v1017_v9 = vadd.f32 %v1011_v4, %v969_v8  ;;  %v3192_v58 = vld [vmem:[#allocation17_spill] sm:$0xff] }
 0x2d0   : > { %v1018_v17 = vadd.f32 %v1012_v53, %v970_v49 }
 0x2d1   : > { %v1059_v50 = vmul.f32 %v2635_v15, %v1041_v18  ;;  %v1060_v20 = vmul.f32 %v2635_v15, %v1042_v7  ;;  %v1102_v29 = vpop.permute.xlu1 %1101  ;;  %1307 = vadd.xlane.f32.xlu1 %v1306_v62  ;;  %v891_v1 = vpop.permute.xlu0 %890 }
 0x2d2   : > { %v1106_v52 = vsel %vm520_vm4, %v2765_v55, %v1102_v29  ;;  %v1109_v38 = vsel %vm520_vm4, %v1102_v29, %v2765_v55  ;;  %v1083_v55 = vmul.f32 %v2650_v19, %v2612_v26 }
 0x2d3   : > { %v1065_v21 = vadd.f32 %v1059_v50, %v1017_v9  ;;  %v1066_v10 = vadd.f32 %v1060_v20, %v1018_v17  ;;  %v1113_v31 = vmul.f32 %v1106_v52, %v2401_v30  ;;  %v1114_v42 = vmul.f32 %v1109_v38, %v2404_v28  ;;  %v3193_v9 = vld [vmem:[#allocation19_spill] sm:$0xff] }
 0x2d5   : > { %v1150_v15 = vpop.permute.xlu1 %1149  ;;  %v1089_v37 = vadd.f32 %v1083_v55, %v1065_v21  ;;  %v1090_v16 = vadd.f32 %v1084_v48, %v1066_v10  ;;  %v1131_v40 = vmul.f32 %v2666_v32, %v1113_v31  ;;  %v1132_v6 = vmul.f32 %v2666_v32, %v1114_v42  ;;  %v936_v36 = vpop.permute.xlu0 %935 }
 0x2d6   : > { %v1154_v44 = vsel %vm564_vm5, %v2777_v46, %v1150_v15  ;;  %v1157_v5 = vsel %vm564_vm5, %v1150_v15, %v2777_v46 }
 0x2d7   : > { %v1161_v25 = vmul.f32 %v1154_v44, %v2431_v3  ;;  %v1162_v63 = vmul.f32 %v1157_v5, %v2434_v54  ;;  %v1137_v61 = vadd.f32 %v1131_v40, %v1089_v37  ;;  %v1138_v32 = vadd.f32 %v1132_v6, %v1090_v16  ;;  %v3194_v44 = vld [vmem:[#allocation22_spill] sm:$0xff] }
 0x2d9   : > { %v1198_v60 = vpop.permute.xlu1 %1197  ;;  %v1179_v19 = vmul.f32 %v3191_v39, %v1161_v25  ;;  %v1180_v12 = vmul.f32 %v3191_v39, %v1162_v63  ;;  %v984_v29 = vpop.permute.xlu0 %983 }
 0x2da   : > { %v1202_v46 = vsel %vm608_vm7, %v2787_v47, %v1198_v60  ;;  %v1205_v26 = vsel %vm608_vm7, %v1198_v60, %v2787_v47 }
 0x2db   : > { %v1209_v56 = vmul.f32 %v1202_v46, %v2497_v27  ;;  %v1210_v4 = vmul.f32 %v1205_v26, %v2500_v11  ;;  %v1185_v8 = vadd.f32 %v1179_v19, %v1137_v61  ;;  %v1186_v49 = vadd.f32 %v1180_v12, %v1138_v32  ;;  %v3196_v61 = vld [vmem:[#allocation6_spill] sm:$0xff]  ;;  %v3197_v32 = vld [vmem:[#allocation11_spill] sm:$0xff] }
 0x2dd   : > { %v1227_v53 = vmul.f32 %v3192_v58, %v1209_v56  ;;  %v1228_v18 = vmul.f32 %v3192_v58, %v1210_v4  ;;  %v1246_v7 = vpop.permute.xlu1 %1245  ;;  %v1032_v55 = vpop.permute.xlu0 %1031 }
 0x2de   : > { %v1250_v62 = vsel %vm652_vm6, %v2795_v14, %v1246_v7  ;;  %v1253_v47 = vsel %vm652_vm6, %v1246_v7, %v2795_v14 }
 0x2df   : > { %v1257_v50 = vmul.f32 %v1250_v62, %v2437_v22  ;;  %v1258_v20 = vmul.f32 %v1253_v47, %v2492_v33  ;;  %v1233_v52 = vadd.f32 %v1227_v53, %v1185_v8  ;;  %v1234_v38 = vadd.f32 %v1228_v18, %v1186_v49  ;;  %v3198_v8 = vld [vmem:[#allocation14_spill] sm:$0xff] }
 0x2e1   : > { %v1275_v17 = vmul.f32 %v3193_v9, %v1257_v50  ;;  %v1276_v21 = vmul.f32 %v3193_v9, %v1258_v20  ;;  %v885_v10 = vpop.permute.xlu1 %884  ;;  %v1242_v12 = vpop.permute.xlu0 %1241 }
 0x2e2   : > { %v897_v63 = vsel %vm330_vm0, %v891_v1, %v885_v10  ;;  %v894_v16 = vsel %vm330_vm0, %v885_v10, %v891_v1  ;;  %v3200_v10 = vld [vmem:[#allocation16_spill] sm:$0xff] }
 0x2e3   : > { %v1281_v31 = vadd.f32 %v1275_v17, %v1233_v52  ;;  %v1282_v42 = vadd.f32 %v1276_v21, %v1234_v38  ;;  %v902_v46 = vmul.f32 %v897_v63, %v3189_v45  ;;  %v903_v39 = vmul.f32 %v894_v16, %v3190_v43 }
 0x2e5   : > { %v930_v15 = vpop.permute.xlu1 %929  ;;  %v2924_v5 = vadd.f32 %v3194_v44, %v1281_v31  ;;  %v2927_v14 = vadd.f32 %v3194_v44, %v1282_v42  ;;  %v923_v45 = vmul.f32 %v3196_v61, %v902_v46 }
 0x2e6   : > { %v939_v48 = vsel %vm372_vm1, %v930_v15, %v936_v36  ;;  %v942_v25 = vsel %vm372_vm1, %v936_v36, %v930_v15 }
 0x2e7   : > { %v1309_v37 = vadd.f32 %v2927_v14, %v2924_v5  ;;  %v947_v40 = vmul.f32 %v942_v25, %v3187_v57  ;;  %v948_v6 = vmul.f32 %v939_v48, %v3188_v2  ;;  %v3195_v57 = vld [vmem:[#allocation5_spill] sm:$0xff] }
 0x2e8   : > { %v3201_v25 = vld [vmem:[#allocation13_spill] sm:$0xff] }
 0x2e9   : > { %1310 = vadd.xlane.f32.xlu0 %v1309_v37  ;;  %v978_v60 = vpop.permute.xlu1 %977  ;;  %v965_v56 = vmul.f32 %v3195_v57, %v947_v40  ;;  %v966_v2 = vmul.f32 %v3195_v57, %v948_v6  ;;  %v1086_v63 = vmul.f32 %v3200_v10, %v3201_v25  ;;  %v282_v25 = vld [vmem:[%s3103_s4 + $0x8] sm:$0xff] }
 0x2ea   : > { %v987_v36 = vsel %vm416_vm2, %v978_v60, %v984_v29  ;;  %v990_v26 = vsel %vm416_vm2, %v984_v29, %v978_v60  ;;  %v1152_v29 = vpop.permute.xlu0 %1151 }
 0x2eb   : > { %v995_v19 = vmul.f32 %v990_v26, %v2336_v0  ;;  %v996_v1 = vmul.f32 %v987_v36, %v2339_v35  ;;  %v924_v0 = vmul.f32 %v3196_v61, %v903_v39  ;;  %v971_v62 = vadd.f32 %v965_v56, %v923_v45  ;;  %v3203_v36 = vld [vmem:[#allocation20_spill] sm:$0xff]  ;;  %v3204_v61 = vld [vmem:[#allocation21_spill] sm:$0xff] }
 0x2ed   : > { %v1026_v4 = vpop.permute.xlu1 %1025  ;;  %v1013_v58 = vmul.f32 %v3197_v32, %v995_v19  ;;  %v1014_v35 = vmul.f32 %v3197_v32, %v996_v1  ;;  %v972_v47 = vadd.f32 %v966_v2, %v924_v0 }
 0x2ee   : > { %v1035_v53 = vsel %vm460_vm3, %v1026_v4, %v1032_v55  ;;  %v1038_v43 = vsel %vm460_vm3, %v1032_v55, %v1026_v4 }
 0x2ef   : > { %v1043_v18 = vmul.f32 %v1038_v43, %v2342_v13  ;;  %v1044_v7 = vmul.f32 %v1035_v53, %v2359_v34  ;;  %v1019_v52 = vadd.f32 %v1013_v58, %v971_v62  ;;  %v1020_v38 = vadd.f32 %v1014_v35, %v972_v47  ;;  %v3199_v13 = vld [vmem:[#allocation12_spill] sm:$0xff] }
 0x2f0   : > { %v1085_v34 = vmul.f32 %v3200_v10, %v3199_v13 }
 0x2f1   : > { %v1061_v49 = vmul.f32 %v3198_v8, %v1043_v18  ;;  %v1062_v50 = vmul.f32 %v3198_v8, %v1044_v7  ;;  %v1146_v20 = vpop.permute.xlu1 %1145 }
 0x2f2   : > { %v1155_v9 = vsel %vm564_vm5, %v1146_v20, %v1152_v29  ;;  %v1158_v17 = vsel %vm564_vm5, %v1152_v29, %v1146_v20 }
 0x2f3   : > { %v1067_v21 = vadd.f32 %v1061_v49, %v1019_v52  ;;  %v1068_v31 = vadd.f32 %v1062_v50, %v1020_v38  ;;  %v1163_v15 = vmul.f32 %v1155_v9, %v2431_v3  ;;  %v1164_v44 = vmul.f32 %v1158_v17, %v2434_v54  ;;  %v3202_v3 = vld [vmem:[#allocation18_spill] sm:$0xff]  ;;  %v280_v17 = vld [vmem:[%s3102_s3] sm:$0x7] }
 0x2f5   : > { %v1104_v42 = vpop.permute.xlu1 %1103  ;;  %v1091_v40 = vadd.f32 %v1085_v34, %v1067_v21  ;;  %v1092_v6 = vadd.f32 %v1086_v63, %v1068_v31  ;;  %v1181_v26 = vmul.f32 %v3203_v36, %v1163_v15  ;;  %v1182_v39 = vmul.f32 %v3203_v36, %v1164_v44  ;;  %v297_v21 = vld [vmem:[%s3104_s5 + $0x40] sm:$0x7]  ;;  %v283_v63 = vld [vmem:[%s3103_s4 + $0x10] sm:$0xff] }
 0x2f6   : > { %v1107_v55 = vsel %vm520_vm4, %v2842_v51, %v1104_v42  ;;  %v1110_v48 = vsel %vm520_vm4, %v1104_v42, %v2842_v51  ;;  %v1298_v8 = vpop.permute.xlu0 %1297 }
 0x2f7   : > { %v1115_v37 = vmul.f32 %v1107_v55, %v2401_v30  ;;  %v1116_v16 = vmul.f32 %v1110_v48, %v2404_v28  ;;  %v1932_v28 = vmov 0.0|0.0   ;;  %v281_v48 = vld [vmem:[%s3103_s4] sm:$0xff] }
 0x2f8   : > { %1686 = vmatprep.subr.bf16.mxu0 %v1932_v28 }
 0x2f9   : > { %v1133_v60 = vmul.f32 %v3202_v3, %v1115_v37  ;;  %v1134_v54 = vmul.f32 %v3202_v3, %v1116_v16  ;;  %v1200_v46 = vpop.permute.xlu1 %1199  ;;  %v298_v37 = vld [vmem:[%s3104_s5 + $0x48] sm:$0xff]  ;;  %v299_v3 = vld [vmem:[%s3104_s5 + $0x50] sm:$0xff] }
 0x2fa   : > { %v1203_v51 = vsel %vm608_vm7, %v2864_v23, %v1200_v46  ;;  %v1206_v30 = vsel %vm608_vm7, %v1200_v46, %v2864_v23 }
 0x2fb   : > { %v1139_v19 = vadd.f32 %v1133_v60, %v1091_v40  ;;  %v1140_v1 = vadd.f32 %v1134_v54, %v1092_v6  ;;  %v1211_v57 = vmul.f32 %v1203_v51, %v2497_v27  ;;  %v1212_v56 = vmul.f32 %v1206_v30, %v2500_v11  ;;  %v3205_v11 = vld [vmem:[#allocation23_spill] sm:$0xff] }
 0x2fd   : > { %v1187_v2 = vadd.f32 %v1181_v26, %v1139_v19  ;;  %v1188_v4 = vadd.f32 %v1182_v39, %v1140_v1  ;;  %v1229_v45 = vmul.f32 %v3204_v61, %v1211_v57  ;;  %v1230_v32 = vmul.f32 %v3204_v61, %v1212_v56  ;;  %v1248_v58 = vpop.permute.xlu1 %1247  ;;  %v300_v26 = vld [vmem:[%s3104_s5 + $0x58] sm:$0xff] }
 0x2fe   : > { %v1251_v53 = vsel %vm652_vm6, %v1242_v12, %v1248_v58  ;;  %v1254_v23 = vsel %vm652_vm6, %v1248_v58, %v1242_v12 }
 0x2ff   : > { %v1259_v43 = vmul.f32 %v1251_v53, %v2437_v22  ;;  %v1260_v0 = vmul.f32 %v1254_v23, %v2492_v33  ;;  %v1235_v27 = vadd.f32 %v1229_v45, %v1187_v2  ;;  %v1236_v35 = vadd.f32 %v1230_v32, %v1188_v4 }
 0x300   : > { %v3206_v22 = vmov 0.0  }
 0x301   : > { %v1277_v18 = vmul.f32 %v3205_v11, %v1259_v43  ;;  %v1278_v7 = vmul.f32 %v3205_v11, %v1260_v0  ;;  %1668 = vmatprep.mubr.msk.f32.mxu0 %vm1933_vm9, %v3206_v22  ;;  %1673 = vmatprep.mubr.msk.f32.mxu1 %vm1933_vm9, %v3206_v22 }
 0x303   : > { %v1283_v62 = vadd.f32 %v1277_v18, %v1235_v27  ;;  %v1284_v47 = vadd.f32 %v1278_v7, %v1236_v35 }
 0x305   : > { %v3003_v49 = vadd.f32 %v1298_v8, %v1283_v62  ;;  %v3005_v50 = vadd.f32 %v1298_v8, %v1284_v47 }
 0x307   : > { %v1312_v59 = vadd.f32 %v3005_v50, %v3003_v49 }
 0x309   : > { %1313 = vadd.xlane.f32.xlu0 %v1312_v59 }
 0x35e   : > { %v1308_v33 = vpop.xlane.xlu1 %1307 }
 0x35f   : > { %v1316_v20 = vmul.f32 0.00390625, %v1308_v33 }
 0x376   : > { %v1311_v12 = vpop.xlane.xlu0 %1310 }
 0x377   : > { %v1317_v29 = vmul.f32 0.00390625, %v1311_v12 }
 0x379   : > { %v1687_v52 = vpack.c.bf16 %v1317_v29, %v1316_v20 }
 0x37b   : > { %1688 = vmatpush3.bf16.msra.mxu0 %v1687_v52 }
 0x37c   : > { %1666 = vmatprep.subr.mxu0 %v3206_v22 }
 0x396   : > { %v1314_v38 = vpop.xlane.xlu0 %1313 }
 0x397   : > { %v1318_v9 = vmul.f32 0.00390625, %v1314_v38 }
 0x399   : > { %1667 = vmatpush3.msra.mxu0 %v1318_v9 }
 0x39a   : > { %1669 = vmatmul.mubr.msk.f32.vlgmr.msra.gmra.mrb[6].mxu0 %vm1319_vm10, %v280_v17 }
 0x46d   : > { %v1389_v13 = vpop.f32.mrb[6].mxu0 }
 0x46e   : > { %v1390_v10 = vadd.f32 %v1389_v13, %v297_v21  ;;  %v1670_v34 = vpop.f32.mrb[7].mxu0 }
 0x470   : > { %v1642_v31 = vmul.f32 -1.442695, %v1390_v10 }
 0x472   : > { %1834 = vpow2.f32 %v1642_v31 }
 0x47c   : > { %v1835_v42 = vpop.eup %1834 }
 0x47d   : > { %v1396_v15 = vadd.f32 1.0, %v1835_v42 }
 0x47f   : > { %1836 = vrcp.f32 %v1396_v15 }
 0x489   : > { %v1837_v44 = vpop.eup %1836 }
 0x48a   : > { %v1399_v55 = vmul.f32 %v1837_v44, %v1390_v10 }
 0x48c   : > { %1672 = vmatpush3.msk.msra.mxu1 %vm1410_vm11, %v1399_v55 }
 0x48d   : > { %1674 = vmatmul.mubr.msk.f32.vlgmr.msra.gmra.mrb[0].mxu1 %vm1400_vm12, %v281_v48 }
 0x48e   : > { %1676 = vmatprep.mubr.msk.f32.mxu1 %vm1933_vm9, %v3206_v22 }
 0x491   : > { %1677 = vmatmul.mubr.msk.f32.gmra.mrb[2].mxu1 %vm1400_vm12, %v282_v25 }
 0x492   : > { %1679 = vmatprep.mubr.msk.f32.mxu1 %vm1933_vm9, %v3206_v22 }
 0x495   : > { %1680 = vmatmul.mubr.msk.f32.gmra.mrb[4].mxu1 %vm1400_vm12, %v283_v63 }
 0x560   : > { %v1480_v16 = vpop.f32.mrb[0].mxu1 }
 0x561   : > { %v1481_v40 = vadd.f32 %v1480_v16, %v298_v37  ;;  %v1675_v6 = vpop.f32.mrb[1].mxu1 }
 0x563   : > { %v1647_v60 = vmul.f32 -1.442695, %v1481_v40 }
 0x564   : > { %v1485_v54 = vpop.f32.mrb[2].mxu1 }
 0x565   : > { %1838 = vpow2.f32 %v1647_v60  ;;  %v1486_v46 = vadd.f32 %v1485_v54, %v299_v3  ;;  %v1678_v36 = vpop.f32.mrb[3].mxu1 }
 0x567   : > { %v1648_v39 = vmul.f32 -1.442695, %v1486_v46 }
 0x568   : > { %v1490_v51 = vpop.f32.mrb[4].mxu1 }
 0x569   : > { %1840 = vpow2.f32 %v1648_v39  ;;  %v1491_v30 = vadd.f32 %v1490_v51, %v300_v26  ;;  %v1681_v28 = vpop.f32.mrb[5].mxu1 }
 0x56b   : > { %v1649_v19 = vmul.f32 -1.442695, %v1491_v30 }
 0x56d   : > { %1842 = vpow2.f32 %v1649_v19 }
 0x56f   : > { %v1839_v1 = vpop.eup %1838 }
 0x570   : > { %v1503_v57 = vadd.f32 1.0, %v1839_v1 }
 0x572   : > { %1844 = vrcp.f32 %v1503_v57 }
 0x573   : > { %v1841_v56 = vpop.eup %1840 }
 0x574   : > { %v1504_v2 = vadd.f32 1.0, %v1841_v56 }
 0x576   : > { %1846 = vrcp.f32 %v1504_v2 }
 0x577   : > { %v1843_v4 = vpop.eup %1842 }
 0x578   : > { %v1505_v61 = vadd.f32 1.0, %v1843_v4 }
 0x57a   : > { %1848 = vrcp.f32 %v1505_v61 }
 0x57c   : > { %v1845_v45 = vpop.eup %1844 }
 0x57d   : > { %1514 = vperm.xlu1 %1793, %v1845_v45  }
 0x580   : > { %v1847_v32 = vpop.eup %1846 }
 0x581   : > { %1519 = vperm.xlu0 %1790, %v1847_v32  }
 0x584   : > { %v1849_v58 = vpop.eup %1848 }
 0x585   : > { %1524 = vperm.xlu1 %1793, %v1849_v58  }
 0x5fc   : > { %v1515_v53 = vpop.permute.xlu1 %1514 }
 0x5fd   : > { %v1527_v23 = vmul.f32 %v1515_v53, %v2857_v41  ;;  %v1528_v43 = vmul.f32 %v1515_v53, %v2860_v24 }
 0x5ff   : > { %1533 = vst [vmem:[%s271_s16] sm:$0xff] %v1527_v23  ;;  %1534 = vst [vmem:[%s271_s16 + $0x8] sm:$0xff] %v1528_v43 }
 0x600   : > { %v1520_v0 = vpop.permute.xlu0 %1519 }
 0x601   : > { %v1529_v27 = vmul.f32 %v1520_v0, %v2924_v5  ;;  %v1530_v35 = vmul.f32 %v1520_v0, %v2927_v14 }
 0x603   : > { %1535 = vst [vmem:[%s271_s16 + $0x10] sm:$0xff] %v1529_v27  ;;  %1536 = vst [vmem:[%s271_s16 + $0x18] sm:$0xff] %v1530_v35 }
 0x604   : > { %v1525_v41 = vpop.permute.xlu1 %1524 }
 0x605   : > { %v1531_v24 = vmul.f32 %v1525_v41, %v3003_v49  ;;  %v1532_v11 = vmul.f32 %v1525_v41, %v3005_v50 }
 0x607   : > { %1537 = vst [vmem:[%s271_s16 + $0x20] sm:$0xff] %v1531_v24  ;;  %1538 = vst [vmem:[%s271_s16 + $0x28] sm:$0xff] %v1532_v11 }
 0x608   : > { %1863 = shalt.err (!%p1860_p3)
}
 0x609   : > { %s1864_s8 = scalar_lea.hbm %s3055_s14, 768  ;;  %s1868_s16 = scalar_lea.hbm %s3106_s7, 1536 }
 0x60a   : > { %p1865_p4 = scmp.ne.s32.totalorder %s3055_s14, %s1864_s8  ;;  %p1869_p9 = scmp.lt.u32.totalorder %s3055_s14, %s3106_s7 }
 0x60b   : > { %p1870_p10 = scmp.lt.u32.totalorder %s1868_s16, %s1864_s8  ;;  %p1872_p12 = scmp.lt.u32.totalorder %s1864_s8, %s3055_s14 }
 0x60c   : > { %p1866_p7 = pnand %p1865_p4, %p2014_p5 }
 0x60d   : > { %p1871_p11 = por %p1870_p10, %p1869_p9 }
 0x60e   : > { %p1867_p8 = pneg %p1866_p7 }
 0x60f   : > { %p1873_p13 = por %p1872_p12, %p1871_p11 }
 0x611   : > { %p1874_p0 = pnand %p1873_p13, %p1867_p8 }
 0x613   : > { %1877 = shalt.err (!%p1874_p0)
}
 0x614   : > { %s1935_s13 = smov 256  }
 0x615   : > { %1691 = dma.vmem_to_hbm [thread:$0]  (%p2014_p5), %s3048_s17, 768, %s3055_s14, %s3057_s28, %s1935_s13, %s1935_s13, %s1919_s23  }
 0x616 PF: > { %p1697_p1 = scmp.ge.s32.totalorder %s1912_s27, 2  ;;  %s1568_s20 = sand.u32 1, %s1900_s24  }
 0x617   : > { %s1569_s21 = scalar_lea.sflag [#allocation3], %s1568_s20 }
 0x618   : > { %p1694_p2 = pnand %p1697_p1, %p2018_p6 }
 0x61a   : > { %1895 = dma.done.wait (!%p1694_p2), %s1569_s21, 768  }
 0x61b   : > { %1897 = vsyncadd (!%p1694_p2), %s1569_s21, 4294966528  ;;  %p17_p3 = scmp.ge.s32.totalorder %s2001_s30, 4   ;;  %s3207_s24 = smov %s1904_s25 }
 0x61c   : > { %s3208_s25 = smov %s1908_s26  ;;  %s3209_s26 = smov %s2012_s10 }
 0x61d   : > { %s3210_s27 = smov %s2001_s30  ;;  %19 = sbr.rel (!%p17_p3) target bundleno = 3 (0x3), region = 90 }
 0x624   :  { %1574 = vsyncpa [#allocation3], 1 }
 0x625   :  { %1576 = vsyncpa [#allocation3 + $0x1], 1 }

</bundles_post_ra>
